<compile_context>
chip_gen: v7x
topology: tpu7x:2x2x1
jax: 0.10.0
libtpu: 0.0.40
codegen_flags: <defaults>
</compile_context>

<pallas_src>
import jax
import jax.numpy as jnp
from jax.experimental import pallas as pl
from jax.experimental.pallas import tpu as pltpu


def caption_net_kernel(img_ref, ix_ref, emb_ref,
                       w_init_ref, b_init_ref,
                       wih_ref, whh_ref, b_gates_ref,
                       wout_ref, bout_ref,
                       out_ref,
                       gx_ref, hs_ref):
    """Single invocation; everything VMEM-resident (small shapes).

    img_ref    : [B, F]      bf16
    ix_ref     : [T*B, 1]    int32   time-major flattened caption ids
    emb_ref    : [V, E]      f32     embedding table
    w_init_ref : [F, 2H]     bf16    [cnn_to_c0.T | cnn_to_h0.T]  (swap preserved)
    b_init_ref : [1, 2H]     f32
    wih_ref    : [E, 4H]     bf16    gate order (i, f, g, o)
    whh_ref    : [H, 4H]     bf16
    b_gates_ref: [1, 4H]     f32     bih + bhh folded
    wout_ref   : [H, V]      bf16
    bout_ref   : [1, V]      f32
    out_ref    : [T*B, V]    f32     row t*B + b
    gx_ref     : [T*B, 4H]   f32     scratch: precomputed input-gate activations
    hs_ref     : [T*B, H]    f32     scratch: per-timestep hidden states
    """
    B = img_ref.shape[0]
    TB = gx_ref.shape[0]
    V, E = emb_ref.shape
    H = whh_ref.shape[0]
    T = TB // B

    # ---- embedding gather in-kernel (V is tiny) ---------------------------
    ix = ix_ref[...]                                     # [TB, 1] int32
    emb = emb_ref[...]                                   # [V, E]  f32
    embx = jnp.zeros((TB, E), jnp.float32)
    for v in range(V):                                   # 4 VPU selects
        embx = jnp.where(ix == v, emb[v][None, :], embx)

    # ---- hoisted input projection: one MXU matmul over all timesteps ------
    gx_ref[...] = (jnp.dot(embx.astype(jnp.bfloat16), wih_ref[...],
                           preferred_element_type=jnp.float32)
                   + b_gates_ref[...])                   # [TB, 4H]

    # ---- initial states from one fused matmul (h0/c0 swap preserved) ------
    hc = (jnp.dot(img_ref[...], w_init_ref[...],
                  preferred_element_type=jnp.float32) + b_init_ref[...])   # [B, 2H]
    h0 = hc[:, :H]
    c0 = hc[:, H:]

    whh = whh_ref[...]

    # ---- recurrence: only the h @ whh matmul is left inside the loop ------
    def step(t, carry):
        h, c = carry
        start = pl.multiple_of(t * B, B)
        gates = gx_ref[pl.ds(start, B), :] + jnp.dot(
            h.astype(jnp.bfloat16), whh, preferred_element_type=jnp.float32)  # [B, 4H]
        i_f = jax.nn.sigmoid(gates[:, :2 * H])           # i and f in one EUP pass
        g_g = jnp.tanh(gates[:, 2 * H:3 * H])
        o_g = jax.nn.sigmoid(gates[:, 3 * H:])
        c_new = i_f[:, H:] * c + i_f[:, :H] * g_g
        h_new = o_g * jnp.tanh(c_new)
        hs_ref[pl.ds(start, B), :] = h_new
        return h_new, c_new

    _ = jax.lax.fori_loop(0, T, step, (h0, c0), unroll=True)

    # ---- hoisted logits projection: one matmul + one bulk store -----------
    out_ref[...] = (jnp.dot(hs_ref[...].astype(jnp.bfloat16), wout_ref[...],
                            preferred_element_type=jnp.float32)
                    + bout_ref[...])                     # [TB, V]


def caption_net_forward(params, image_vectors, captions_ix):
    """JAX wrapper: weight repacking (glue) + one pallas_call."""
    B, _ = image_vectors.shape
    T = captions_ix.shape[1]
    V, E = params["emb"].shape
    H = params["cnn_to_c0_w"].shape[0]
    TB = T * B
    bf16, f32 = jnp.bfloat16, jnp.float32

    # time-major flattening: row t*B + b == captions_ix[b, t]
    ix_flat = captions_ix.T.reshape(TB, 1).astype(jnp.int32)

    # Intentional swap reproduced: h0 <- cnn_to_c0, c0 <- cnn_to_h0.
    w_init = jnp.concatenate(
        [params["cnn_to_c0_w"].T, params["cnn_to_h0_w"].T], axis=1).astype(bf16)  # [F, 2H]
    b_init = jnp.concatenate(
        [params["cnn_to_c0_b"], params["cnn_to_h0_b"]])[None, :].astype(f32)      # [1, 2H]
    b_gates = (params["b_ih"] + params["b_hh"])[None, :].astype(f32)              # [1, 4H]

    args = (
        image_vectors.astype(bf16),                 # [B, F]
        ix_flat,                                    # [TB, 1]
        params["emb"].astype(f32),                  # [V, E]
        w_init, b_init,
        params["w_ih"].T.astype(bf16),              # [E, 4H]
        params["w_hh"].T.astype(bf16),              # [H, 4H]
        b_gates,
        params["logits_w"].T.astype(bf16),          # [H, V]
        params["logits_b"][None, :].astype(f32),    # [1, V]
    )

    out_flat = pl.pallas_call(
        caption_net_kernel,
        out_shape=jax.ShapeDtypeStruct((TB, V), f32),
        in_specs=[pl.BlockSpec(memory_space=pltpu.MemorySpace.VMEM)] * len(args),
        out_specs=pl.BlockSpec(memory_space=pltpu.MemorySpace.VMEM),
        scratch_shapes=[
            pltpu.VMEM((TB, 4 * H), f32),   # precomputed input-gate activations
            pltpu.VMEM((TB, H), f32),       # stacked hidden states
        ],
    )(*args)

    # TODO(synk): at realistic vocab/sequence sizes, tile the V axis of wout/out
    # (lane-dense tiles, multiple of 128) with a grid + dimension_semantics
    # ("parallel",...) so v7x's second TensorCore is used and VMEM stays bounded.
    return jnp.transpose(out_flat.reshape(T, B, V), (1, 0, 2))   # [B, T, V]


def caption_net_reference(params, image_vectors, captions_ix):
    """Pure-JAX f32 reference mirroring PyTorch semantics (incl. the h0/c0 swap)."""
    h = image_vectors @ params["cnn_to_c0_w"].T + params["cnn_to_c0_b"]
    c = image_vectors @ params["cnn_to_h0_w"].T + params["cnn_to_h0_b"]
    emb = params["emb"][captions_ix]                          # [B, T, E]
    wih, whh = params["w_ih"].T, params["w_hh"].T
    bih, bhh = params["b_ih"], params["b_hh"]
    H = h.shape[1]
    outs = []
    for t in range(emb.shape[1]):
        x = emb[:, t]
        gates = x @ wih + bih + h @ whh + bhh
        i_g = jax.nn.sigmoid(gates[:, 0 * H:1 * H])
        f_g = jax.nn.sigmoid(gates[:, 1 * H:2 * H])
        g_g = jnp.tanh(gates[:, 2 * H:3 * H])
        o_g = jax.nn.sigmoid(gates[:, 3 * H:4 * H])
        c = f_g * c + i_g * g_g
        h = o_g * jnp.tanh(c)
        outs.append(h @ params["logits_w"].T + params["logits_b"])
    return jnp.stack(outs, axis=1)                            # [B, T, V]


def init_params(key, n_tokens, emb_size, lstm_units, cnn_feature_size):
    ks = jax.random.split(key, 10)
    s = 0.02
    f32 = jnp.float32
    return {
        "cnn_to_h0_w": s * jax.random.normal(ks[0], (lstm_units, cnn_feature_size), f32),
        "cnn_to_h0_b": s * jax.random.normal(ks[1], (lstm_units,), f32),
        "cnn_to_c0_w": s * jax.random.normal(ks[2], (lstm_units, cnn_feature_size), f32),
        "cnn_to_c0_b": s * jax.random.normal(ks[3], (lstm_units,), f32),
        "emb":         s * jax.random.normal(ks[4], (n_tokens, emb_size), f32),
        "w_ih":        s * jax.random.normal(ks[5], (4 * lstm_units, emb_size), f32),
        "b_ih":        s * jax.random.normal(ks[6], (4 * lstm_units,), f32),
        "w_hh":        s * jax.random.normal(ks[7], (4 * lstm_units, lstm_units), f32),
        "b_hh":        s * jax.random.normal(ks[8], (4 * lstm_units,), f32),
        "logits_w":    s * jax.random.normal(ks[9], (n_tokens, lstm_units), f32),
        "logits_b":    jnp.zeros((n_tokens,), f32),
    }


if __name__ == "__main__":
    # Small shapes consistent with the module (vocab size is fixed at 4).
    N_TOKENS = 4           # len(['#UNK#', '#START#', '#END#', '#PAD#'])
    EMB_SIZE = 128
    LSTM_UNITS = 128
    CNN_FEATURE_SIZE = 256
    BATCH = 8
    SEQ = 8

    root = jax.random.PRNGKey(0)
    k_params, k_img, k_cap = jax.random.split(root, 3)

    params = init_params(k_params, N_TOKENS, EMB_SIZE, LSTM_UNITS, CNN_FEATURE_SIZE)
    image_vectors = jax.random.normal(k_img, (BATCH, CNN_FEATURE_SIZE), jnp.float32)
    captions_ix = jax.random.randint(k_cap, (BATCH, SEQ), 0, N_TOKENS, dtype=jnp.int32)

    logits = jax.jit(caption_net_forward)(params, image_vectors, captions_ix)
    logits = jax.block_until_ready(logits)

    assert logits.shape == (BATCH, SEQ, N_TOKENS), logits.shape

    ref = caption_net_reference(params, image_vectors, captions_ix)
    assert jnp.allclose(logits, ref, rtol=2e-2, atol=2e-2), (
        float(jnp.max(jnp.abs(logits - ref))))

    print("KERNEL_OK")
</pallas_src>

<mosaic_0001>
module attributes {stable_mosaic.version = 11 : i64} {
  func.func @caption_net_kernel(%arg0: memref<8x256xbf16, #tpu.memory_space<vmem>>, %arg1: memref<64x1xi32, #tpu.memory_space<vmem>>, %arg2: memref<4x128xf32, #tpu.memory_space<vmem>>, %arg3: memref<256x256xbf16, #tpu.memory_space<vmem>>, %arg4: memref<1x256xf32, #tpu.memory_space<vmem>>, %arg5: memref<128x512xbf16, #tpu.memory_space<vmem>>, %arg6: memref<128x512xbf16, #tpu.memory_space<vmem>>, %arg7: memref<1x512xf32, #tpu.memory_space<vmem>>, %arg8: memref<128x4xbf16, #tpu.memory_space<vmem>>, %arg9: memref<1x4xf32, #tpu.memory_space<vmem>>, %arg10: memref<64x4xf32, #tpu.memory_space<vmem>>, %arg11: memref<64x512xf32, #tpu.memory_space<vmem>>, %arg12: memref<64x128xf32, #tpu.memory_space<vmem>>) attributes {dimension_semantics = [], scalar_prefetch = 0 : i64, scratch_operands = 2 : i64, tpu.core_type = #tpu.core_type<tc>} {
    %c0 = arith.constant 0 : index
    %c0_0 = arith.constant 0 : index
    %0 = vector.load %arg1[%c0, %c0_0] : memref<64x1xi32, #tpu.memory_space<vmem>>, vector<64x1xi32>
    %c0_1 = arith.constant 0 : index
    %c0_2 = arith.constant 0 : index
    %1 = vector.load %arg2[%c0_1, %c0_2] : memref<4x128xf32, #tpu.memory_space<vmem>>, vector<4x128xf32>
    %cst = arith.constant 0.000000e+00 : f32
    %2 = vector.broadcast %cst : f32 to vector<64x128xf32>
    %c0_i32 = arith.constant 0 : i32
    %3 = vector.broadcast %c0_i32 : i32 to vector<64x1xi32>
    %4 = arith.cmpi eq, %0, %3 : vector<64x1xi32>
    %5 = vector.extract_strided_slice %1 {offsets = [0, 0], sizes = [1, 128], strides = [1, 1]} : vector<4x128xf32> to vector<1x128xf32>
    %6 = vector.shape_cast %5 : vector<1x128xf32> to vector<128xf32>
    %7 = vector.shape_cast %6 : vector<128xf32> to vector<1x128xf32>
    %8 = vector.shape_cast %4 : vector<64x1xi1> to vector<64x1xi1>
    %9 = vector.broadcast %8 : vector<64x1xi1> to vector<64x128xi1>
    %10 = vector.shape_cast %7 : vector<1x128xf32> to vector<1x128xf32>
    %11 = vector.broadcast %10 : vector<1x128xf32> to vector<64x128xf32>
    %12 = arith.select %9, %11, %2 : vector<64x128xi1>, vector<64x128xf32>
    %c1_i32 = arith.constant 1 : i32
    %13 = vector.broadcast %c1_i32 : i32 to vector<64x1xi32>
    %14 = arith.cmpi eq, %0, %13 : vector<64x1xi32>
    %15 = vector.extract_strided_slice %1 {offsets = [1, 0], sizes = [1, 128], strides = [1, 1]} : vector<4x128xf32> to vector<1x128xf32>
    %16 = vector.shape_cast %15 : vector<1x128xf32> to vector<128xf32>
    %17 = vector.shape_cast %16 : vector<128xf32> to vector<1x128xf32>
    %18 = vector.shape_cast %14 : vector<64x1xi1> to vector<64x1xi1>
    %19 = vector.broadcast %18 : vector<64x1xi1> to vector<64x128xi1>
    %20 = vector.shape_cast %17 : vector<1x128xf32> to vector<1x128xf32>
    %21 = vector.broadcast %20 : vector<1x128xf32> to vector<64x128xf32>
    %22 = arith.select %19, %21, %12 : vector<64x128xi1>, vector<64x128xf32>
    %c2_i32 = arith.constant 2 : i32
    %23 = vector.broadcast %c2_i32 : i32 to vector<64x1xi32>
    %24 = arith.cmpi eq, %0, %23 : vector<64x1xi32>
    %25 = vector.extract_strided_slice %1 {offsets = [2, 0], sizes = [1, 128], strides = [1, 1]} : vector<4x128xf32> to vector<1x128xf32>
    %26 = vector.shape_cast %25 : vector<1x128xf32> to vector<128xf32>
    %27 = vector.shape_cast %26 : vector<128xf32> to vector<1x128xf32>
    %28 = vector.shape_cast %24 : vector<64x1xi1> to vector<64x1xi1>
    %29 = vector.broadcast %28 : vector<64x1xi1> to vector<64x128xi1>
    %30 = vector.shape_cast %27 : vector<1x128xf32> to vector<1x128xf32>
    %31 = vector.broadcast %30 : vector<1x128xf32> to vector<64x128xf32>
    %32 = arith.select %29, %31, %22 : vector<64x128xi1>, vector<64x128xf32>
    %c3_i32 = arith.constant 3 : i32
    %33 = vector.broadcast %c3_i32 : i32 to vector<64x1xi32>
    %34 = arith.cmpi eq, %0, %33 : vector<64x1xi32>
    %35 = vector.extract_strided_slice %1 {offsets = [3, 0], sizes = [1, 128], strides = [1, 1]} : vector<4x128xf32> to vector<1x128xf32>
    %36 = vector.shape_cast %35 : vector<1x128xf32> to vector<128xf32>
    %37 = vector.shape_cast %36 : vector<128xf32> to vector<1x128xf32>
    %38 = vector.shape_cast %34 : vector<64x1xi1> to vector<64x1xi1>
    %39 = vector.broadcast %38 : vector<64x1xi1> to vector<64x128xi1>
    %40 = vector.shape_cast %37 : vector<1x128xf32> to vector<1x128xf32>
    %41 = vector.broadcast %40 : vector<1x128xf32> to vector<64x128xf32>
    %42 = arith.select %39, %41, %32 : vector<64x128xi1>, vector<64x128xf32>
    %43 = arith.truncf %42 : vector<64x128xf32> to vector<64x128xbf16>
    %c0_3 = arith.constant 0 : index
    %c0_4 = arith.constant 0 : index
    %44 = vector.load %arg5[%c0_3, %c0_4] : memref<128x512xbf16, #tpu.memory_space<vmem>>, vector<128x512xbf16>
    %cst_5 = arith.constant dense<0.000000e+00> : vector<64x512xf32>
    %45 = tpu.matmul %43, %44, %cst_5 {dimension_numbers = #tpu.dot_dimension_numbers<[1], [0], [0], [1], [0, 0, 1, 1], [], []>} : vector<64x128xbf16>, vector<128x512xbf16>, vector<64x512xf32> -> vector<64x512xf32>
    %c0_6 = arith.constant 0 : index
    %c0_7 = arith.constant 0 : index
    %46 = vector.load %arg7[%c0_6, %c0_7] : memref<1x512xf32, #tpu.memory_space<vmem>>, vector<1x512xf32>
    %47 = vector.broadcast %46 : vector<1x512xf32> to vector<64x512xf32>
    %48 = arith.addf %45, %47 : vector<64x512xf32>
    %c0_8 = arith.constant 0 : index
    %c0_9 = arith.constant 0 : index
    %49 = vector.load %arg11[%c0_8, %c0_9] : memref<64x512xf32, #tpu.memory_space<vmem>>, vector<64x512xf32>
    tpu.vector_store %arg11[%c0_8, %c0_9], %48 {strides = array<i32>} : memref<64x512xf32, #tpu.memory_space<vmem>>, vector<64x512xf32>,
    %c0_10 = arith.constant 0 : index
    %c0_11 = arith.constant 0 : index
    %50 = vector.load %arg0[%c0_10, %c0_11] : memref<8x256xbf16, #tpu.memory_space<vmem>>, vector<8x256xbf16>
    %c0_12 = arith.constant 0 : index
    %c0_13 = arith.constant 0 : index
    %51 = vector.load %arg3[%c0_12, %c0_13] : memref<256x256xbf16, #tpu.memory_space<vmem>>, vector<256x256xbf16>
    %cst_14 = arith.constant dense<0.000000e+00> : vector<8x256xf32>
    %52 = tpu.matmul %50, %51, %cst_14 {dimension_numbers = #tpu.dot_dimension_numbers<[1], [0], [0], [1], [0, 0, 1, 1], [], []>} : vector<8x256xbf16>, vector<256x256xbf16>, vector<8x256xf32> -> vector<8x256xf32>
    %c0_15 = arith.constant 0 : index
    %c0_16 = arith.constant 0 : index
    %53 = vector.load %arg4[%c0_15, %c0_16] : memref<1x256xf32, #tpu.memory_space<vmem>>, vector<1x256xf32>
    %54 = vector.broadcast %53 : vector<1x256xf32> to vector<8x256xf32>
    %55 = arith.addf %52, %54 : vector<8x256xf32>
    %56 = vector.extract_strided_slice %55 {offsets = [0, 0], sizes = [8, 128], strides = [1, 1]} : vector<8x256xf32> to vector<8x128xf32>
    %57 = vector.extract_strided_slice %55 {offsets = [0, 128], sizes = [8, 128], strides = [1, 1]} : vector<8x256xf32> to vector<8x128xf32>
    %c0_17 = arith.constant 0 : index
    %c0_18 = arith.constant 0 : index
    %58 = vector.load %arg6[%c0_17, %c0_18] : memref<128x512xbf16, #tpu.memory_space<vmem>>, vector<128x512xbf16>
    %c0_i32_19 = arith.constant 0 : i32
    %c8_i32 = arith.constant 8 : i32
    %59 = arith.muli %c0_i32_19, %c8_i32 : i32
    %60 = tpu.assume_multiple %59, 8 : i32
    %61 = arith.index_cast %60 : i32 to index
    %c0_20 = arith.constant 0 : index
    %62 = vector.load %arg11[%61, %c0_20] : memref<64x512xf32, #tpu.memory_space<vmem>>, vector<8x512xf32>
    %63 = arith.truncf %56 : vector<8x128xf32> to vector<8x128xbf16>
    %cst_21 = arith.constant dense<0.000000e+00> : vector<8x512xf32>
    %64 = tpu.matmul %63, %58, %cst_21 {dimension_numbers = #tpu.dot_dimension_numbers<[1], [0], [0], [1], [0, 0, 1, 1], [], []>} : vector<8x128xbf16>, vector<128x512xbf16>, vector<8x512xf32> -> vector<8x512xf32>
    %65 = arith.addf %62, %64 : vector<8x512xf32>
    %66 = vector.extract_strided_slice %65 {offsets = [0, 0], sizes = [8, 256], strides = [1, 1]} : vector<8x512xf32> to vector<8x256xf32>
    %67 = arith.negf %66 : vector<8x256xf32>
    %68 = math.exp %67 : vector<8x256xf32>
    %cst_22 = arith.constant 1.000000e+00 : f32
    %69 = vector.broadcast %cst_22 : f32 to vector<8x256xf32>
    %70 = arith.addf %69, %68 : vector<8x256xf32>
    %71 = arith.divf %69, %70 : vector<8x256xf32>
    %72 = vector.extract_strided_slice %65 {offsets = [0, 256], sizes = [8, 128], strides = [1, 1]} : vector<8x512xf32> to vector<8x128xf32>
    %73 = math.tanh %72 : vector<8x128xf32>
    %74 = vector.extract_strided_slice %65 {offsets = [0, 384], sizes = [8, 128], strides = [1, 1]} : vector<8x512xf32> to vector<8x128xf32>
    %75 = arith.negf %74 : vector<8x128xf32>
    %76 = math.exp %75 : vector<8x128xf32>
    %cst_23 = arith.constant 1.000000e+00 : f32
    %77 = vector.broadcast %cst_23 : f32 to vector<8x128xf32>
    %78 = arith.addf %77, %76 : vector<8x128xf32>
    %79 = arith.divf %77, %78 : vector<8x128xf32>
    %80 = vector.extract_strided_slice %71 {offsets = [0, 128], sizes = [8, 128], strides = [1, 1]} : vector<8x256xf32> to vector<8x128xf32>
    %81 = arith.mulf %80, %57 : vector<8x128xf32>
    %82 = vector.extract_strided_slice %71 {offsets = [0, 0], sizes = [8, 128], strides = [1, 1]} : vector<8x256xf32> to vector<8x128xf32>
    %83 = arith.mulf %82, %73 : vector<8x128xf32>
    %84 = arith.addf %81, %83 : vector<8x128xf32>
    %85 = math.tanh %84 : vector<8x128xf32>
    %86 = arith.mulf %79, %85 : vector<8x128xf32>
    %87 = arith.index_cast %60 : i32 to index
    %c0_24 = arith.constant 0 : index
    %88 = vector.load %arg12[%87, %c0_24] : memref<64x128xf32, #tpu.memory_space<vmem>>, vector<8x128xf32>
    tpu.vector_store %arg12[%87, %c0_24], %86 {strides = array<i32>} : memref<64x128xf32, #tpu.memory_space<vmem>>, vector<8x128xf32>,
    %c1_i32_25 = arith.constant 1 : i32
    %c8_i32_26 = arith.constant 8 : i32
    %89 = arith.muli %c1_i32_25, %c8_i32_26 : i32
    %90 = tpu.assume_multiple %89, 8 : i32
    %91 = arith.index_cast %90 : i32 to index
    %c0_27 = arith.constant 0 : index
    %92 = vector.load %arg11[%91, %c0_27] : memref<64x512xf32, #tpu.memory_space<vmem>>, vector<8x512xf32>
    %93 = arith.truncf %86 : vector<8x128xf32> to vector<8x128xbf16>
    %cst_28 = arith.constant dense<0.000000e+00> : vector<8x512xf32>
    %94 = tpu.matmul %93, %58, %cst_28 {dimension_numbers = #tpu.dot_dimension_numbers<[1], [0], [0], [1], [0, 0, 1, 1], [], []>} : vector<8x128xbf16>, vector<128x512xbf16>, vector<8x512xf32> -> vector<8x512xf32>
    %95 = arith.addf %92, %94 : vector<8x512xf32>
    %96 = vector.extract_strided_slice %95 {offsets = [0, 0], sizes = [8, 256], strides = [1, 1]} : vector<8x512xf32> to vector<8x256xf32>
    %97 = arith.negf %96 : vector<8x256xf32>
    %98 = math.exp %97 : vector<8x256xf32>
    %cst_29 = arith.constant 1.000000e+00 : f32
    %99 = vector.broadcast %cst_29 : f32 to vector<8x256xf32>
    %100 = arith.addf %99, %98 : vector<8x256xf32>
    %101 = arith.divf %99, %100 : vector<8x256xf32>
    %102 = vector.extract_strided_slice %95 {offsets = [0, 256], sizes = [8, 128], strides = [1, 1]} : vector<8x512xf32> to vector<8x128xf32>
    %103 = math.tanh %102 : vector<8x128xf32>
    %104 = vector.extract_strided_slice %95 {offsets = [0, 384], sizes = [8, 128], strides = [1, 1]} : vector<8x512xf32> to vector<8x128xf32>
    %105 = arith.negf %104 : vector<8x128xf32>
    %106 = math.exp %105 : vector<8x128xf32>
    %cst_30 = arith.constant 1.000000e+00 : f32
    %107 = vector.broadcast %cst_30 : f32 to vector<8x128xf32>
    %108 = arith.addf %107, %106 : vector<8x128xf32>
    %109 = arith.divf %107, %108 : vector<8x128xf32>
    %110 = vector.extract_strided_slice %101 {offsets = [0, 128], sizes = [8, 128], strides = [1, 1]} : vector<8x256xf32> to vector<8x128xf32>
    %111 = arith.mulf %110, %84 : vector<8x128xf32>
    %112 = vector.extract_strided_slice %101 {offsets = [0, 0], sizes = [8, 128], strides = [1, 1]} : vector<8x256xf32> to vector<8x128xf32>
    %113 = arith.mulf %112, %103 : vector<8x128xf32>
    %114 = arith.addf %111, %113 : vector<8x128xf32>
    %115 = math.tanh %114 : vector<8x128xf32>
    %116 = arith.mulf %109, %115 : vector<8x128xf32>
    %117 = arith.index_cast %90 : i32 to index
    %c0_31 = arith.constant 0 : index
    %118 = vector.load %arg12[%117, %c0_31] : memref<64x128xf32, #tpu.memory_space<vmem>>, vector<8x128xf32>
    tpu.vector_store %arg12[%117, %c0_31], %116 {strides = array<i32>} : memref<64x128xf32, #tpu.memory_space<vmem>>, vector<8x128xf32>,
    %c2_i32_32 = arith.constant 2 : i32
    %c8_i32_33 = arith.constant 8 : i32
    %119 = arith.muli %c2_i32_32, %c8_i32_33 : i32
    %120 = tpu.assume_multiple %119, 8 : i32
    %121 = arith.index_cast %120 : i32 to index
    %c0_34 = arith.constant 0 : index
    %122 = vector.load %arg11[%121, %c0_34] : memref<64x512xf32, #tpu.memory_space<vmem>>, vector<8x512xf32>
    %123 = arith.truncf %116 : vector<8x128xf32> to vector<8x128xbf16>
    %cst_35 = arith.constant dense<0.000000e+00> : vector<8x512xf32>
    %124 = tpu.matmul %123, %58, %cst_35 {dimension_numbers = #tpu.dot_dimension_numbers<[1], [0], [0], [1], [0, 0, 1, 1], [], []>} : vector<8x128xbf16>, vector<128x512xbf16>, vector<8x512xf32> -> vector<8x512xf32>
    %125 = arith.addf %122, %124 : vector<8x512xf32>
    %126 = vector.extract_strided_slice %125 {offsets = [0, 0], sizes = [8, 256], strides = [1, 1]} : vector<8x512xf32> to vector<8x256xf32>
    %127 = arith.negf %126 : vector<8x256xf32>
    %128 = math.exp %127 : vector<8x256xf32>
    %cst_36 = arith.constant 1.000000e+00 : f32
    %129 = vector.broadcast %cst_36 : f32 to vector<8x256xf32>
    %130 = arith.addf %129, %128 : vector<8x256xf32>
    %131 = arith.divf %129, %130 : vector<8x256xf32>
    %132 = vector.extract_strided_slice %125 {offsets = [0, 256], sizes = [8, 128], strides = [1, 1]} : vector<8x512xf32> to vector<8x128xf32>
    %133 = math.tanh %132 : vector<8x128xf32>
    %134 = vector.extract_strided_slice %125 {offsets = [0, 384], sizes = [8, 128], strides = [1, 1]} : vector<8x512xf32> to vector<8x128xf32>
    %135 = arith.negf %134 : vector<8x128xf32>
    %136 = math.exp %135 : vector<8x128xf32>
    %cst_37 = arith.constant 1.000000e+00 : f32
    %137 = vector.broadcast %cst_37 : f32 to vector<8x128xf32>
    %138 = arith.addf %137, %136 : vector<8x128xf32>
    %139 = arith.divf %137, %138 : vector<8x128xf32>
    %140 = vector.extract_strided_slice %131 {offsets = [0, 128], sizes = [8, 128], strides = [1, 1]} : vector<8x256xf32> to vector<8x128xf32>
    %141 = arith.mulf %140, %114 : vector<8x128xf32>
    %142 = vector.extract_strided_slice %131 {offsets = [0, 0], sizes = [8, 128], strides = [1, 1]} : vector<8x256xf32> to vector<8x128xf32>
    %143 = arith.mulf %142, %133 : vector<8x128xf32>
    %144 = arith.addf %141, %143 : vector<8x128xf32>
    %145 = math.tanh %144 : vector<8x128xf32>
    %146 = arith.mulf %139, %145 : vector<8x128xf32>
    %147 = arith.index_cast %120 : i32 to index
    %c0_38 = arith.constant 0 : index
    %148 = vector.load %arg12[%147, %c0_38] : memref<64x128xf32, #tpu.memory_space<vmem>>, vector<8x128xf32>
    tpu.vector_store %arg12[%147, %c0_38], %146 {strides = array<i32>} : memref<64x128xf32, #tpu.memory_space<vmem>>, vector<8x128xf32>,
    %c3_i32_39 = arith.constant 3 : i32
    %c8_i32_40 = arith.constant 8 : i32
    %149 = arith.muli %c3_i32_39, %c8_i32_40 : i32
    %150 = tpu.assume_multiple %149, 8 : i32
    %151 = arith.index_cast %150 : i32 to index
    %c0_41 = arith.constant 0 : index
    %152 = vector.load %arg11[%151, %c0_41] : memref<64x512xf32, #tpu.memory_space<vmem>>, vector<8x512xf32>
    %153 = arith.truncf %146 : vector<8x128xf32> to vector<8x128xbf16>
    %cst_42 = arith.constant dense<0.000000e+00> : vector<8x512xf32>
    %154 = tpu.matmul %153, %58, %cst_42 {dimension_numbers = #tpu.dot_dimension_numbers<[1], [0], [0], [1], [0, 0, 1, 1], [], []>} : vector<8x128xbf16>, vector<128x512xbf16>, vector<8x512xf32> -> vector<8x512xf32>
    %155 = arith.addf %152, %154 : vector<8x512xf32>
    %156 = vector.extract_strided_slice %155 {offsets = [0, 0], sizes = [8, 256], strides = [1, 1]} : vector<8x512xf32> to vector<8x256xf32>
    %157 = arith.negf %156 : vector<8x256xf32>
    %158 = math.exp %157 : vector<8x256xf32>
    %cst_43 = arith.constant 1.000000e+00 : f32
    %159 = vector.broadcast %cst_43 : f32 to vector<8x256xf32>
    %160 = arith.addf %159, %158 : vector<8x256xf32>
    %161 = arith.divf %159, %160 : vector<8x256xf32>
    %162 = vector.extract_strided_slice %155 {offsets = [0, 256], sizes = [8, 128], strides = [1, 1]} : vector<8x512xf32> to vector<8x128xf32>
    %163 = math.tanh %162 : vector<8x128xf32>
    %164 = vector.extract_strided_slice %155 {offsets = [0, 384], sizes = [8, 128], strides = [1, 1]} : vector<8x512xf32> to vector<8x128xf32>
    %165 = arith.negf %164 : vector<8x128xf32>
    %166 = math.exp %165 : vector<8x128xf32>
    %cst_44 = arith.constant 1.000000e+00 : f32
    %167 = vector.broadcast %cst_44 : f32 to vector<8x128xf32>
    %168 = arith.addf %167, %166 : vector<8x128xf32>
    %169 = arith.divf %167, %168 : vector<8x128xf32>
    %170 = vector.extract_strided_slice %161 {offsets = [0, 128], sizes = [8, 128], strides = [1, 1]} : vector<8x256xf32> to vector<8x128xf32>
    %171 = arith.mulf %170, %144 : vector<8x128xf32>
    %172 = vector.extract_strided_slice %161 {offsets = [0, 0], sizes = [8, 128], strides = [1, 1]} : vector<8x256xf32> to vector<8x128xf32>
    %173 = arith.mulf %172, %163 : vector<8x128xf32>
    %174 = arith.addf %171, %173 : vector<8x128xf32>
    %175 = math.tanh %174 : vector<8x128xf32>
    %176 = arith.mulf %169, %175 : vector<8x128xf32>
    %177 = arith.index_cast %150 : i32 to index
    %c0_45 = arith.constant 0 : index
    %178 = vector.load %arg12[%177, %c0_45] : memref<64x128xf32, #tpu.memory_space<vmem>>, vector<8x128xf32>
    tpu.vector_store %arg12[%177, %c0_45], %176 {strides = array<i32>} : memref<64x128xf32, #tpu.memory_space<vmem>>, vector<8x128xf32>,
    %c4_i32 = arith.constant 4 : i32
    %c8_i32_46 = arith.constant 8 : i32
    %179 = arith.muli %c4_i32, %c8_i32_46 : i32
    %180 = tpu.assume_multiple %179, 8 : i32
    %181 = arith.index_cast %180 : i32 to index
    %c0_47 = arith.constant 0 : index
    %182 = vector.load %arg11[%181, %c0_47] : memref<64x512xf32, #tpu.memory_space<vmem>>, vector<8x512xf32>
    %183 = arith.truncf %176 : vector<8x128xf32> to vector<8x128xbf16>
    %cst_48 = arith.constant dense<0.000000e+00> : vector<8x512xf32>
    %184 = tpu.matmul %183, %58, %cst_48 {dimension_numbers = #tpu.dot_dimension_numbers<[1], [0], [0], [1], [0, 0, 1, 1], [], []>} : vector<8x128xbf16>, vector<128x512xbf16>, vector<8x512xf32> -> vector<8x512xf32>
    %185 = arith.addf %182, %184 : vector<8x512xf32>
    %186 = vector.extract_strided_slice %185 {offsets = [0, 0], sizes = [8, 256], strides = [1, 1]} : vector<8x512xf32> to vector<8x256xf32>
    %187 = arith.negf %186 : vector<8x256xf32>
    %188 = math.exp %187 : vector<8x256xf32>
    %cst_49 = arith.constant 1.000000e+00 : f32
    %189 = vector.broadcast %cst_49 : f32 to vector<8x256xf32>
    %190 = arith.addf %189, %188 : vector<8x256xf32>
    %191 = arith.divf %189, %190 : vector<8x256xf32>
    %192 = vector.extract_strided_slice %185 {offsets = [0, 256], sizes = [8, 128], strides = [1, 1]} : vector<8x512xf32> to vector<8x128xf32>
    %193 = math.tanh %192 : vector<8x128xf32>
    %194 = vector.extract_strided_slice %185 {offsets = [0, 384], sizes = [8, 128], strides = [1, 1]} : vector<8x512xf32> to vector<8x128xf32>
    %195 = arith.negf %194 : vector<8x128xf32>
    %196 = math.exp %195 : vector<8x128xf32>
    %cst_50 = arith.constant 1.000000e+00 : f32
    %197 = vector.broadcast %cst_50 : f32 to vector<8x128xf32>
    %198 = arith.addf %197, %196 : vector<8x128xf32>
    %199 = arith.divf %197, %198 : vector<8x128xf32>
    %200 = vector.extract_strided_slice %191 {offsets = [0, 128], sizes = [8, 128], strides = [1, 1]} : vector<8x256xf32> to vector<8x128xf32>
    %201 = arith.mulf %200, %174 : vector<8x128xf32>
    %202 = vector.extract_strided_slice %191 {offsets = [0, 0], sizes = [8, 128], strides = [1, 1]} : vector<8x256xf32> to vector<8x128xf32>
    %203 = arith.mulf %202, %193 : vector<8x128xf32>
    %204 = arith.addf %201, %203 : vector<8x128xf32>
    %205 = math.tanh %204 : vector<8x128xf32>
    %206 = arith.mulf %199, %205 : vector<8x128xf32>
    %207 = arith.index_cast %180 : i32 to index
    %c0_51 = arith.constant 0 : index
    %208 = vector.load %arg12[%207, %c0_51] : memref<64x128xf32, #tpu.memory_space<vmem>>, vector<8x128xf32>
    tpu.vector_store %arg12[%207, %c0_51], %206 {strides = array<i32>} : memref<64x128xf32, #tpu.memory_space<vmem>>, vector<8x128xf32>,
    %c5_i32 = arith.constant 5 : i32
    %c8_i32_52 = arith.constant 8 : i32
    %209 = arith.muli %c5_i32, %c8_i32_52 : i32
    %210 = tpu.assume_multiple %209, 8 : i32
    %211 = arith.index_cast %210 : i32 to index
    %c0_53 = arith.constant 0 : index
    %212 = vector.load %arg11[%211, %c0_53] : memref<64x512xf32, #tpu.memory_space<vmem>>, vector<8x512xf32>
    %213 = arith.truncf %206 : vector<8x128xf32> to vector<8x128xbf16>
    %cst_54 = arith.constant dense<0.000000e+00> : vector<8x512xf32>
    %214 = tpu.matmul %213, %58, %cst_54 {dimension_numbers = #tpu.dot_dimension_numbers<[1], [0], [0], [1], [0, 0, 1, 1], [], []>} : vector<8x128xbf16>, vector<128x512xbf16>, vector<8x512xf32> -> vector<8x512xf32>
    %215 = arith.addf %212, %214 : vector<8x512xf32>
    %216 = vector.extract_strided_slice %215 {offsets = [0, 0], sizes = [8, 256], strides = [1, 1]} : vector<8x512xf32> to vector<8x256xf32>
    %217 = arith.negf %216 : vector<8x256xf32>
    %218 = math.exp %217 : vector<8x256xf32>
    %cst_55 = arith.constant 1.000000e+00 : f32
    %219 = vector.broadcast %cst_55 : f32 to vector<8x256xf32>
    %220 = arith.addf %219, %218 : vector<8x256xf32>
    %221 = arith.divf %219, %220 : vector<8x256xf32>
    %222 = vector.extract_strided_slice %215 {offsets = [0, 256], sizes = [8, 128], strides = [1, 1]} : vector<8x512xf32> to vector<8x128xf32>
    %223 = math.tanh %222 : vector<8x128xf32>
    %224 = vector.extract_strided_slice %215 {offsets = [0, 384], sizes = [8, 128], strides = [1, 1]} : vector<8x512xf32> to vector<8x128xf32>
    %225 = arith.negf %224 : vector<8x128xf32>
    %226 = math.exp %225 : vector<8x128xf32>
    %cst_56 = arith.constant 1.000000e+00 : f32
    %227 = vector.broadcast %cst_56 : f32 to vector<8x128xf32>
    %228 = arith.addf %227, %226 : vector<8x128xf32>
    %229 = arith.divf %227, %228 : vector<8x128xf32>
    %230 = vector.extract_strided_slice %221 {offsets = [0, 128], sizes = [8, 128], strides = [1, 1]} : vector<8x256xf32> to vector<8x128xf32>
    %231 = arith.mulf %230, %204 : vector<8x128xf32>
    %232 = vector.extract_strided_slice %221 {offsets = [0, 0], sizes = [8, 128], strides = [1, 1]} : vector<8x256xf32> to vector<8x128xf32>
    %233 = arith.mulf %232, %223 : vector<8x128xf32>
    %234 = arith.addf %231, %233 : vector<8x128xf32>
    %235 = math.tanh %234 : vector<8x128xf32>
    %236 = arith.mulf %229, %235 : vector<8x128xf32>
    %237 = arith.index_cast %210 : i32 to index
    %c0_57 = arith.constant 0 : index
    %238 = vector.load %arg12[%237, %c0_57] : memref<64x128xf32, #tpu.memory_space<vmem>>, vector<8x128xf32>
    tpu.vector_store %arg12[%237, %c0_57], %236 {strides = array<i32>} : memref<64x128xf32, #tpu.memory_space<vmem>>, vector<8x128xf32>,
    %c6_i32 = arith.constant 6 : i32
    %c8_i32_58 = arith.constant 8 : i32
    %239 = arith.muli %c6_i32, %c8_i32_58 : i32
    %240 = tpu.assume_multiple %239, 8 : i32
    %241 = arith.index_cast %240 : i32 to index
    %c0_59 = arith.constant 0 : index
    %242 = vector.load %arg11[%241, %c0_59] : memref<64x512xf32, #tpu.memory_space<vmem>>, vector<8x512xf32>
    %243 = arith.truncf %236 : vector<8x128xf32> to vector<8x128xbf16>
    %cst_60 = arith.constant dense<0.000000e+00> : vector<8x512xf32>
    %244 = tpu.matmul %243, %58, %cst_60 {dimension_numbers = #tpu.dot_dimension_numbers<[1], [0], [0], [1], [0, 0, 1, 1], [], []>} : vector<8x128xbf16>, vector<128x512xbf16>, vector<8x512xf32> -> vector<8x512xf32>
    %245 = arith.addf %242, %244 : vector<8x512xf32>
    %246 = vector.extract_strided_slice %245 {offsets = [0, 0], sizes = [8, 256], strides = [1, 1]} : vector<8x512xf32> to vector<8x256xf32>
    %247 = arith.negf %246 : vector<8x256xf32>
    %248 = math.exp %247 : vector<8x256xf32>
    %cst_61 = arith.constant 1.000000e+00 : f32
    %249 = vector.broadcast %cst_61 : f32 to vector<8x256xf32>
    %250 = arith.addf %249, %248 : vector<8x256xf32>
    %251 = arith.divf %249, %250 : vector<8x256xf32>
    %252 = vector.extract_strided_slice %245 {offsets = [0, 256], sizes = [8, 128], strides = [1, 1]} : vector<8x512xf32> to vector<8x128xf32>
    %253 = math.tanh %252 : vector<8x128xf32>
    %254 = vector.extract_strided_slice %245 {offsets = [0, 384], sizes = [8, 128], strides = [1, 1]} : vector<8x512xf32> to vector<8x128xf32>
    %255 = arith.negf %254 : vector<8x128xf32>
    %256 = math.exp %255 : vector<8x128xf32>
    %cst_62 = arith.constant 1.000000e+00 : f32
    %257 = vector.broadcast %cst_62 : f32 to vector<8x128xf32>
    %258 = arith.addf %257, %256 : vector<8x128xf32>
    %259 = arith.divf %257, %258 : vector<8x128xf32>
    %260 = vector.extract_strided_slice %251 {offsets = [0, 128], sizes = [8, 128], strides = [1, 1]} : vector<8x256xf32> to vector<8x128xf32>
    %261 = arith.mulf %260, %234 : vector<8x128xf32>
    %262 = vector.extract_strided_slice %251 {offsets = [0, 0], sizes = [8, 128], strides = [1, 1]} : vector<8x256xf32> to vector<8x128xf32>
    %263 = arith.mulf %262, %253 : vector<8x128xf32>
    %264 = arith.addf %261, %263 : vector<8x128xf32>
    %265 = math.tanh %264 : vector<8x128xf32>
    %266 = arith.mulf %259, %265 : vector<8x128xf32>
    %267 = arith.index_cast %240 : i32 to index
    %c0_63 = arith.constant 0 : index
    %268 = vector.load %arg12[%267, %c0_63] : memref<64x128xf32, #tpu.memory_space<vmem>>, vector<8x128xf32>
    tpu.vector_store %arg12[%267, %c0_63], %266 {strides = array<i32>} : memref<64x128xf32, #tpu.memory_space<vmem>>, vector<8x128xf32>,
    %c7_i32 = arith.constant 7 : i32
    %c8_i32_64 = arith.constant 8 : i32
    %269 = arith.muli %c7_i32, %c8_i32_64 : i32
    %270 = tpu.assume_multiple %269, 8 : i32
    %271 = arith.index_cast %270 : i32 to index
    %c0_65 = arith.constant 0 : index
    %272 = vector.load %arg11[%271, %c0_65] : memref<64x512xf32, #tpu.memory_space<vmem>>, vector<8x512xf32>
    %273 = arith.truncf %266 : vector<8x128xf32> to vector<8x128xbf16>
    %cst_66 = arith.constant dense<0.000000e+00> : vector<8x512xf32>
    %274 = tpu.matmul %273, %58, %cst_66 {dimension_numbers = #tpu.dot_dimension_numbers<[1], [0], [0], [1], [0, 0, 1, 1], [], []>} : vector<8x128xbf16>, vector<128x512xbf16>, vector<8x512xf32> -> vector<8x512xf32>
    %275 = arith.addf %272, %274 : vector<8x512xf32>
    %276 = vector.extract_strided_slice %275 {offsets = [0, 0], sizes = [8, 256], strides = [1, 1]} : vector<8x512xf32> to vector<8x256xf32>
    %277 = arith.negf %276 : vector<8x256xf32>
    %278 = math.exp %277 : vector<8x256xf32>
    %cst_67 = arith.constant 1.000000e+00 : f32
    %279 = vector.broadcast %cst_67 : f32 to vector<8x256xf32>
    %280 = arith.addf %279, %278 : vector<8x256xf32>
    %281 = arith.divf %279, %280 : vector<8x256xf32>
    %282 = vector.extract_strided_slice %275 {offsets = [0, 256], sizes = [8, 128], strides = [1, 1]} : vector<8x512xf32> to vector<8x128xf32>
    %283 = math.tanh %282 : vector<8x128xf32>
    %284 = vector.extract_strided_slice %275 {offsets = [0, 384], sizes = [8, 128], strides = [1, 1]} : vector<8x512xf32> to vector<8x128xf32>
    %285 = arith.negf %284 : vector<8x128xf32>
    %286 = math.exp %285 : vector<8x128xf32>
    %cst_68 = arith.constant 1.000000e+00 : f32
    %287 = vector.broadcast %cst_68 : f32 to vector<8x128xf32>
    %288 = arith.addf %287, %286 : vector<8x128xf32>
    %289 = arith.divf %287, %288 : vector<8x128xf32>
    %290 = vector.extract_strided_slice %281 {offsets = [0, 128], sizes = [8, 128], strides = [1, 1]} : vector<8x256xf32> to vector<8x128xf32>
    %291 = arith.mulf %290, %264 : vector<8x128xf32>
    %292 = vector.extract_strided_slice %281 {offsets = [0, 0], sizes = [8, 128], strides = [1, 1]} : vector<8x256xf32> to vector<8x128xf32>
    %293 = arith.mulf %292, %283 : vector<8x128xf32>
    %294 = arith.addf %291, %293 : vector<8x128xf32>
    %295 = math.tanh %294 : vector<8x128xf32>
    %296 = arith.mulf %289, %295 : vector<8x128xf32>
    %297 = arith.index_cast %270 : i32 to index
    %c0_69 = arith.constant 0 : index
    %298 = vector.load %arg12[%297, %c0_69] : memref<64x128xf32, #tpu.memory_space<vmem>>, vector<8x128xf32>
    tpu.vector_store %arg12[%297, %c0_69], %296 {strides = array<i32>} : memref<64x128xf32, #tpu.memory_space<vmem>>, vector<8x128xf32>,
    %c8_i32_70 = arith.constant 8 : i32
    %c0_71 = arith.constant 0 : index
    %c0_72 = arith.constant 0 : index
    %299 = vector.load %arg12[%c0_71, %c0_72] : memref<64x128xf32, #tpu.memory_space<vmem>>, vector<64x128xf32>
    %300 = arith.truncf %299 : vector<64x128xf32> to vector<64x128xbf16>
    %c0_73 = arith.constant 0 : index
    %c0_74 = arith.constant 0 : index
    %301 = vector.load %arg8[%c0_73, %c0_74] : memref<128x4xbf16, #tpu.memory_space<vmem>>, vector<128x4xbf16>
    %cst_75 = arith.constant dense<0.000000e+00> : vector<64x4xf32>
    %302 = tpu.matmul %300, %301, %cst_75 {dimension_numbers = #tpu.dot_dimension_numbers<[1], [0], [0], [1], [0, 0, 1, 1], [], []>} : vector<64x128xbf16>, vector<128x4xbf16>, vector<64x4xf32> -> vector<64x4xf32>
    %c0_76 = arith.constant 0 : index
    %c0_77 = arith.constant 0 : index
    %303 = vector.load %arg9[%c0_76, %c0_77] : memref<1x4xf32, #tpu.memory_space<vmem>>, vector<1x4xf32>
    %304 = vector.broadcast %303 : vector<1x4xf32> to vector<64x4xf32>
    %305 = arith.addf %302, %304 : vector<64x4xf32>
    %c0_78 = arith.constant 0 : index
    %c0_79 = arith.constant 0 : index
    %306 = vector.load %arg10[%c0_78, %c0_79] : memref<64x4xf32, #tpu.memory_space<vmem>>, vector<64x4xf32>
    tpu.vector_store %arg10[%c0_78, %c0_79], %305 {strides = array<i32>} : memref<64x4xf32, #tpu.memory_space<vmem>>, vector<64x4xf32>,
    return
  }
}

</mosaic_0001>

<bundles_post_ra>
// kernel: caption_net_forward.1
= control target key start
LH: loop header
LB: loop body
LE: loop exit
PB: predicated region body
PF: predicated region fallthrough
CT: control target
= control target key end

     0   :  { %v3949_v0 = vmov 0   ;;  %s3938_s3 = inlined_call_operand.vmem [shape: bf16[256,256], index: 3, kind: input, shape index: {}]   ;;  %s3939_s1 = inlined_call_operand.vmem [shape: s32[64,1], index: 1, kind: input, shape index: {}]   ;;  %s3940_s0 = inlined_call_operand.vmem [shape: bf16[8,256], index: 0, kind: input, shape index: {}]   ;;  %s3941_s5 = inlined_call_operand.vmem [shape: bf16[128,512], index: 5, kind: input, shape index: {}]   ;;  %s3942_s6 = inlined_call_operand.vmem [shape: bf16[128,512], index: 6, kind: input, shape index: {}]   ;;  %s3943_s2 = inlined_call_operand.vmem [shape: f32[4,128], index: 2, kind: input, shape index: {}]   ;;  %s3944_s4 = inlined_call_operand.vmem [shape: f32[1,256], index: 4, kind: input, shape index: {}]   ;;  %s3945_s7 = inlined_call_operand.vmem [shape: f32[1,512], index: 7, kind: input, shape index: {}]   ;;  %s3946_s8 = inlined_call_operand.vmem [shape: bf16[128,4], index: 8, kind: input, shape index: {}]   ;;  %s3947_s9 = inlined_call_operand.vmem [shape: f32[1,4], index: 9, kind: input, shape index: {}]   ;;  %s3948_s10 = inlined_call_operand.vmem [shape: f32[64,4], index: 10, kind: output, shape index: {}]  }
   0x1   :  { %2422 = vset.pattern.permute.xlu1 %v3949_v0  ;;  %2421 = vset.pattern.permute.xlu0 %v3949_v0  ;;  %v2423_v1 = vld [vmem:[%s3938_s3 + $0x4] ss:$8 sps:$4 sm:$0xff]   ;;  %v2425_v3 = vld [vmem:[%s3938_s3] ss:$8 sps:$4 sm:$0xff]   ;;  %v2426_v4 = vld [vmem:[%s3938_s3 + $0x14] ss:$8 sps:$4 sm:$0xff]  }
   0x2   :  { %v36_v2 = vld [vmem:[%s3939_s1] sm:$0xff]  ;;  %535 = vmatprep.mubr.bf16.mxu1 %v3949_v0  ;;  %893 = vmatprep.subr.bf16.mxu0 %v2423_v1  ;;  %v37_v5 = vld [vmem:[%s3939_s1 + $0x8] sm:$0xff]  ;;  %v2428_v8 = vld [vmem:[%s3938_s3 + $0x10] ss:$8 sps:$4 sm:$0xff]  }
   0x3   :  { %vm105_vm0 = vcmp.eq.s32.totalorder %v36_v2, 1  ;;  %vm45_vm1 = vcmp.eq.s32.totalorder %v36_v2, 0  ;;  %894 = vmatpush1.bf16.msra.mxu0 %v2425_v3  ;;  %vm106_vm2 = vcmp.eq.s32.totalorder %v37_v5, 1  ;;  %vm46_vm3 = vcmp.eq.s32.totalorder %v37_v5, 0  ;;  %v2429_v11 = vld [vmem:[%s3938_s3 + $0x24] ss:$8 sps:$4 sm:$0xff]  }
   0x4   :  { %v113_v6 = vsel %vm105_vm0, 1, %v3949_v0  ;;  %v53_v7 = vsel %vm45_vm1, 1, %v3949_v0  ;;  %895 = vmatprep.subr.bf16.mxu0 %v2426_v4  ;;  %v114_v9 = vsel %vm106_vm2, 1, %v3949_v0  ;;  %v54_v10 = vsel %vm46_vm3, 1, %v3949_v0  ;;  %v2431_v12 = vld [vmem:[%s3938_s3 + $0x20] ss:$8 sps:$4 sm:$0xff]  }
   0x5   :  { %122 = vperm.xlu1 %2422, %v113_v6   ;;  %62 = vperm.xlu0 %2421, %v53_v7   ;;  %vm166_vm4 = vcmp.eq.s32.totalorder %v37_v5, 2  ;;  %vm165_vm5 = vcmp.eq.s32.totalorder %v36_v2, 2  ;;  %v2432_v15 = vld [vmem:[%s3938_s3 + $0x34] ss:$8 sps:$4 sm:$0xff]   ;;  %vm226_vm6 = vcmp.eq.s32.totalorder %v37_v5, 3  ;;  %vm225_vm7 = vcmp.eq.s32.totalorder %v36_v2, 3 }
   0x6   :  { %v174_v13 = vsel %vm166_vm4, 1, %v3949_v0  ;;  %v173_v14 = vsel %vm165_vm5, 1, %v3949_v0  ;;  %v2434_v16 = vld [vmem:[%s3938_s3 + $0x30] ss:$8 sps:$4 sm:$0xff]   ;;  %v234_v19 = vsel %vm226_vm6, 1, %v3949_v0  ;;  %v233_v20 = vsel %vm225_vm7, 1, %v3949_v0 }
   0x7   :  { %896 = vmatpush1.bf16.msra.mxu0 %v2428_v8  ;;  %v39_v17 = vld [vmem:[%s3939_s1 + $0x18] sm:$0xff]  ;;  %v38_v18 = vld [vmem:[%s3939_s1 + $0x10] sm:$0xff]  ;;  %v2435_v21 = vld [vmem:[%s3938_s3 + $0x44] ss:$8 sps:$4 sm:$0xff]  }
   0x8   :  { %897 = vmatprep.subr.bf16.mxu0 %v2429_v11  ;;  %vm48_vm8 = vcmp.eq.s32.totalorder %v39_v17, 0  ;;  %vm47_vm9 = vcmp.eq.s32.totalorder %v38_v18, 0  ;;  %v2437_v22 = vld [vmem:[%s3938_s3 + $0x40] ss:$8 sps:$4 sm:$0xff]   ;;  %v2438_v25 = vld [vmem:[%s3938_s3 + $0x54] ss:$8 sps:$4 sm:$0xff]  }
   0x9   :  { %125 = vperm.xlu1 %2422, %v114_v9   ;;  %65 = vperm.xlu0 %2421, %v54_v10   ;;  %v56_v23 = vsel %vm48_vm8, 1, %v3949_v0  ;;  %v55_v24 = vsel %vm47_vm9, 1, %v3949_v0  ;;  %vm108_vm10 = vcmp.eq.s32.totalorder %v39_v17, 1  ;;  %vm107_vm11 = vcmp.eq.s32.totalorder %v38_v18, 1  ;;  %v2440_v26 = vld [vmem:[%s3938_s3 + $0x50] ss:$8 sps:$4 sm:$0xff]  }
   0xa   :  { %v116_v27 = vsel %vm108_vm10, 1, %v3949_v0  ;;  %v115_v28 = vsel %vm107_vm11, 1, %v3949_v0  ;;  %v2441_v29 = vld [vmem:[%s3938_s3 + $0x64] ss:$8 sps:$4 sm:$0xff]   ;;  %vm168_vm12 = vcmp.eq.s32.totalorder %v39_v17, 2  ;;  %vm167_vm13 = vcmp.eq.s32.totalorder %v38_v18, 2 }
   0xb   :  { %898 = vmatpush1.bf16.msra.mxu0 %v2431_v12  ;;  %v2443_v30 = vld [vmem:[%s3938_s3 + $0x60] ss:$8 sps:$4 sm:$0xff]   ;;  %v176_v31 = vsel %vm168_vm12, 1, %v3949_v0  ;;  %v175_v32 = vsel %vm167_vm13, 1, %v3949_v0  ;;  %v2444_v33 = vld [vmem:[%s3938_s3 + $0x74] ss:$8 sps:$4 sm:$0xff]  }
   0xc   :  { %899 = vmatprep.subr.bf16.mxu0 %v2432_v15  ;;  %vm228_vm14 = vcmp.eq.s32.totalorder %v39_v17, 3  ;;  %vm227_vm15 = vcmp.eq.s32.totalorder %v38_v18, 3  ;;  %v2446_v34 = vld [vmem:[%s3938_s3 + $0x70] ss:$8 sps:$4 sm:$0xff]   ;;  %v2872_v35 = vld [vmem:[%s3939_s1 + $0x28] sm:$0xff]  ;;  %v2877_v36 = vld [vmem:[%s3939_s1 + $0x20] sm:$0xff] }
   0xd   :  { %185 = vperm.xlu1 %2422, %v174_v13   ;;  %182 = vperm.xlu0 %2421, %v173_v14   ;;  %v236_v37 = vsel %vm228_vm14, 1, %v3949_v0  ;;  %v2883_v38 = vld [vmem:[%s3940_s0] sm:$0xff]  ;;  %v235_v39 = vsel %vm227_vm15, 1, %v3949_v0  ;;  %vm50_vm0 = vcmp.eq.s32.totalorder %v2872_v35, 0  ;;  %vm49_vm1 = vcmp.eq.s32.totalorder %v2877_v36, 0  ;;  %v2948_v62 = vld [vmem:[%s3939_s1 + $0x38] sm:$0xff] }
   0xe   :  { %v2447_v40 = vld [vmem:[%s3938_s3 + $0x84] ss:$8 sps:$4 sm:$0xff]   ;;  %v2286_v41 = vcombine.high %v2883_v38, %v2883_v38  ;;  %v2475_v43 = vld [vmem:[%s3941_s5] ss:$16 sps:$4 sm:$0xff]   ;;  %v58_v46 = vsel %vm50_vm0, 1, %v3949_v0  ;;  %v57_v47 = vsel %vm49_vm1, 1, %v3949_v0 }
   0xf   :  { %900 = vmatpush1.bf16.msra.mxu0 %v2434_v16  ;;  %v2473_v42 = vld [vmem:[%s3941_s5 + $0x4] ss:$16 sps:$4 sm:$0xff]   ;;  %v2449_v44 = vld [vmem:[%s3938_s3 + $0x80] ss:$8 sps:$4 sm:$0xff]   ;;  %vm110_vm2 = vcmp.eq.s32.totalorder %v2872_v35, 1  ;;  %vm109_vm3 = vcmp.eq.s32.totalorder %v2877_v36, 1 }
  0x10   :  { %901 = vmatprep.subr.bf16.mxu0 %v2435_v21  ;;  %925 = vmatprep.mubr.bf16.mxu0 %v2286_v41  ;;  %v2476_v45 = vld [vmem:[%s3941_s5 + $0x24] ss:$16 sps:$4 sm:$0xff]   ;;  %v2478_v49 = vld [vmem:[%s3941_s5 + $0x20] ss:$16 sps:$4 sm:$0xff]   ;;  %v118_v52 = vsel %vm110_vm2, 1, %v3949_v0  ;;  %v117_v53 = vsel %vm109_vm3, 1, %v3949_v0  ;;  %v93_v41 = vlaneseq }
  0x11   :  { %245 = vperm.xlu1 %2422, %v234_v19   ;;  %242 = vperm.xlu0 %2421, %v233_v20   ;;  %v2450_v48 = vld [vmem:[%s3938_s3 + $0x94] ss:$8 sps:$4 sm:$0xff]   ;;  %v2452_v50 = vld [vmem:[%s3938_s3 + $0x90] ss:$8 sps:$4 sm:$0xff]   ;;  %v2453_v54 = vld [vmem:[%s3938_s3 + $0xa4] ss:$8 sps:$4 sm:$0xff]  }
  0x12   :  { %503 = vmatprep.subr.bf16.mxu1 %v2473_v42  ;;  %v2479_v51 = vld [vmem:[%s3941_s5 + $0x44] ss:$16 sps:$4 sm:$0xff]   ;;  %vm170_vm4 = vcmp.eq.s32.totalorder %v2872_v35, 2  ;;  %vm169_vm5 = vcmp.eq.s32.totalorder %v2877_v36, 2  ;;  %v2455_v55 = vld [vmem:[%s3938_s3 + $0xa0] ss:$8 sps:$4 sm:$0xff]  }
  0x13   :  { %902 = vmatpush1.bf16.msra.mxu0 %v2437_v22  ;;  %504 = vmatpush1.bf16.msra.mxu1 %v2475_v43  ;;  %v2481_v56 = vld [vmem:[%s3941_s5 + $0x40] ss:$16 sps:$4 sm:$0xff]   ;;  %v2456_v57 = vld [vmem:[%s3938_s3 + $0xb4] ss:$8 sps:$4 sm:$0xff]   ;;  %v178_v59 = vsel %vm170_vm4, 1, %v3949_v0  ;;  %v177_v60 = vsel %vm169_vm5, 1, %v3949_v0 }
  0x14   :  { %903 = vmatprep.subr.bf16.mxu0 %v2438_v25  ;;  %505 = vmatprep.subr.bf16.mxu1 %v2476_v45  ;;  %v2482_v58 = vld [vmem:[%s3941_s5 + $0x64] ss:$16 sps:$4 sm:$0xff]   ;;  %v2458_v61 = vld [vmem:[%s3938_s3 + $0xb0] ss:$8 sps:$4 sm:$0xff]   ;;  %vm230_vm6 = vcmp.eq.s32.totalorder %v2872_v35, 3  ;;  %vm229_vm7 = vcmp.eq.s32.totalorder %v2877_v36, 3 }
  0x15   :  { %71 = vperm.xlu1 %2422, %v56_v23   ;;  %68 = vperm.xlu0 %2421, %v55_v24   ;;  %v2953_v63 = vld [vmem:[%s3939_s1 + $0x30] sm:$0xff]  ;;  %v2459_v2 = vld [vmem:[%s3938_s3 + $0xc4] ss:$8 sps:$4 sm:$0xff]   ;;  %v238_v4 = vsel %vm230_vm6, 1, %v3949_v0  ;;  %v237_v5 = vsel %vm229_vm7, 1, %v3949_v0  ;;  %vm52_vm8 = vcmp.eq.s32.totalorder %v2948_v62, 0 }
  0x16   :  { %v2484_v1 = vld [vmem:[%s3941_s5 + $0x60] ss:$16 sps:$4 sm:$0xff]   ;;  %v2485_v3 = vld [vmem:[%s3941_s5 + $0x84] ss:$16 sps:$4 sm:$0xff]   ;;  %vm51_vm9 = vcmp.eq.s32.totalorder %v2953_v63, 0  ;;  %v60_v9 = vsel %vm52_vm8, 1, %v3949_v0 }
  0x17   :  { %904 = vmatpush1.bf16.msra.mxu0 %v2440_v26  ;;  %506 = vmatpush1.bf16.msra.mxu1 %v2478_v49  ;;  %v2487_v6 = vld [vmem:[%s3941_s5 + $0x80] ss:$16 sps:$4 sm:$0xff]   ;;  %v2488_v8 = vld [vmem:[%s3941_s5 + $0xa4] ss:$16 sps:$4 sm:$0xff]   ;;  %v59_v10 = vsel %vm51_vm9, 1, %v3949_v0  ;;  %vm112_vm10 = vcmp.eq.s32.totalorder %v2948_v62, 1 }
  0x18   :  { %905 = vmatprep.subr.bf16.mxu0 %v2441_v29  ;;  %507 = vmatprep.subr.bf16.mxu1 %v2479_v51  ;;  %v2461_v7 = vld [vmem:[%s3938_s3 + $0xc0] ss:$8 sps:$4 sm:$0xff]   ;;  %v2462_v11 = vld [vmem:[%s3938_s3 + $0xd4] ss:$8 sps:$4 sm:$0xff]   ;;  %vm111_vm11 = vcmp.eq.s32.totalorder %v2953_v63, 1  ;;  %v120_v15 = vsel %vm112_vm10, 1, %v3949_v0  ;;  %v2285_v29 = vcombine.low %v2883_v38, %v2883_v38 }
  0x19   :  { %131 = vperm.xlu1 %2422, %v116_v27   ;;  %128 = vperm.xlu0 %2421, %v115_v28   ;;  %v2490_v12 = vld [vmem:[%s3941_s5 + $0xa0] ss:$16 sps:$4 sm:$0xff]   ;;  %v2491_v14 = vld [vmem:[%s3941_s5 + $0xc4] ss:$16 sps:$4 sm:$0xff]   ;;  %v119_v16 = vsel %vm111_vm11, 1, %v3949_v0  ;;  %vm172_vm12 = vcmp.eq.s32.totalorder %v2948_v62, 2 }
  0x1a   :  { %v2464_v13 = vld [vmem:[%s3938_s3 + $0xd0] ss:$8 sps:$4 sm:$0xff]   ;;  %v2465_v17 = vld [vmem:[%s3938_s3 + $0xe4] ss:$8 sps:$4 sm:$0xff]   ;;  %vm171_vm13 = vcmp.eq.s32.totalorder %v2953_v63, 2  ;;  %v180_v21 = vsel %vm172_vm12, 1, %v3949_v0 }
  0x1b   :  { %906 = vmatpush1.bf16.msra.mxu0 %v2443_v30  ;;  %508 = vmatpush1.bf16.msra.mxu1 %v2481_v56  ;;  %v2493_v18 = vld [vmem:[%s3941_s5 + $0xc0] ss:$16 sps:$4 sm:$0xff]   ;;  %v2494_v20 = vld [vmem:[%s3941_s5 + $0xe4] ss:$16 sps:$4 sm:$0xff]   ;;  %v179_v22 = vsel %vm171_vm13, 1, %v3949_v0  ;;  %vm232_vm14 = vcmp.eq.s32.totalorder %v2948_v62, 3 }
  0x1c   :  { %907 = vmatprep.subr.bf16.mxu0 %v2444_v33  ;;  %509 = vmatprep.subr.bf16.mxu1 %v2482_v58  ;;  %v2467_v19 = vld [vmem:[%s3938_s3 + $0xe0] ss:$8 sps:$4 sm:$0xff]   ;;  %v2468_v23 = vld [vmem:[%s3938_s3 + $0xf4] ss:$8 sps:$4 sm:$0xff]   ;;  %vm231_vm15 = vcmp.eq.s32.totalorder %v2953_v63, 3  ;;  %v240_v27 = vsel %vm232_vm14, 1, %v3949_v0 }
  0x1d   :  { %191 = vperm.xlu1 %2422, %v176_v31   ;;  %188 = vperm.xlu0 %2421, %v175_v32   ;;  %v2496_v24 = vld [vmem:[%s3941_s5 + $0xe0] ss:$16 sps:$4 sm:$0xff]   ;;  %v2499_v26 = vld [vmem:[%s3941_s5 + $0xc] ss:$16 sps:$4 sm:$0xff]   ;;  %v239_v28 = vsel %vm231_vm15, 1, %v3949_v0 }
  0x1e   :  { %v2470_v25 = vld [vmem:[%s3938_s3 + $0xf0] ss:$8 sps:$4 sm:$0xff]   ;;  %v3035_v30 = vld [vmem:[%s3942_s6 + $0x4] ss:$16 sps:$4 sm:$0xff]  }
  0x1f   :  { %908 = vmatpush1.bf16.msra.mxu0 %v2446_v34  ;;  %510 = vmatpush1.bf16.msra.mxu1 %v2484_v1  ;;  %v3040_v31 = vld [vmem:[%s3942_s6] ss:$16 sps:$4 sm:$0xff]   ;;  %v3045_v32 = vld [vmem:[%s3942_s6 + $0x24] ss:$16 sps:$4 sm:$0xff]  }
  0x20   :  { %909 = vmatprep.subr.bf16.mxu0 %v2447_v40  ;;  %511 = vmatprep.subr.bf16.mxu1 %v2485_v3  ;;  %v3053_v33 = vld [vmem:[%s3942_s6 + $0x20] ss:$16 sps:$4 sm:$0xff]   ;;  %v3058_v34 = vld [vmem:[%s3942_s6 + $0x44] ss:$16 sps:$4 sm:$0xff]  }
  0x21   :  { %251 = vperm.xlu1 %2422, %v236_v37   ;;  %248 = vperm.xlu0 %2421, %v235_v39   ;;  %v3065_v35 = vld [vmem:[%s3942_s6 + $0x40] ss:$16 sps:$4 sm:$0xff]   ;;  %v3070_v36 = vld [vmem:[%s3942_s6 + $0x64] ss:$16 sps:$4 sm:$0xff]  }
  0x22   :  { %v3075_v37 = vld [vmem:[%s3942_s6 + $0x60] ss:$16 sps:$4 sm:$0xff]   ;;  %v3081_v38 = vld [vmem:[%s3942_s6 + $0x84] ss:$16 sps:$4 sm:$0xff]  }
  0x23   :  { %910 = vmatpush1.bf16.msra.mxu0 %v2449_v44  ;;  %512 = vmatpush1.bf16.msra.mxu1 %v2487_v6  ;;  %v3089_v39 = vld [vmem:[%s3942_s6 + $0x80] ss:$16 sps:$4 sm:$0xff]   ;;  %v3094_v40 = vld [vmem:[%s3942_s6 + $0xa4] ss:$16 sps:$4 sm:$0xff]   ;;  %v3108_v44 = vshrl.u32 %v93_v41, 7 }
  0x24   :  { %911 = vmatprep.subr.bf16.mxu0 %v2450_v48  ;;  %513 = vmatprep.subr.bf16.mxu1 %v2488_v8  ;;  %v3101_v42 = vld [vmem:[%s3942_s6 + $0xa0] ss:$16 sps:$4 sm:$0xff]   ;;  %v3106_v43 = vld [vmem:[%s3942_s6 + $0xc4] ss:$16 sps:$4 sm:$0xff]   ;;  %v2497_v8 = vld [vmem:[%s3941_s5 + $0x8] ss:$16 sps:$4 sm:$0xff]  }
  0x25   :  { %77 = vperm.xlu1 %2422, %v58_v46   ;;  %74 = vperm.xlu0 %2421, %v57_v47   ;;  %v3115_v45 = vld [vmem:[%s3942_s6 + $0xc0] ss:$16 sps:$4 sm:$0xff]   ;;  %v3118_v46 = vsub.s32 0, %v3108_v44  ;;  %v3125_v49 = vsub.s32 1, %v3108_v44  ;;  %v275_v58 = vsub.s32 3, %v3108_v44 }
  0x26   :  { %v44_v47 = vld [vmem:[%s3943_s2] sm:$0xf]  ;;  %v2511_v41 = vld [vmem:[%s3941_s5 + $0x8c] ss:$16 sps:$4 sm:$0xff]  }
  0x27   :  { %912 = vmatpush1.bf16.msra.mxu0 %v2452_v50  ;;  %514 = vmatpush1.bf16.msra.mxu1 %v2490_v12  ;;  %v3128_v51 = vrot.slane %v44_v47, %v3118_v46  ;;  %v3145_v1 = vrot.slane %v44_v47, %v275_v58 }
  0x28   :  { %913 = vmatprep.subr.bf16.mxu0 %v2453_v54  ;;  %515 = vmatprep.subr.bf16.mxu1 %v2491_v14  ;;  %v2500_v14 = vld [vmem:[%s3941_s5 + $0x28] ss:$16 sps:$4 sm:$0xff]  }
  0x29   :  { %137 = vperm.xlu1 %2422, %v118_v52   ;;  %134 = vperm.xlu0 %2421, %v117_v53   ;;  %v215_v52 = vsub.s32 2, %v3108_v44  ;;  %v3132_v53 = vrot.slane %v44_v47, %v3125_v49 }
  0x2b   :  { %914 = vmatpush1.bf16.msra.mxu0 %v2455_v55  ;;  %516 = vmatpush1.bf16.msra.mxu1 %v2493_v18 }
  0x2c   :  { %915 = vmatprep.subr.bf16.mxu0 %v2456_v57  ;;  %517 = vmatprep.subr.bf16.mxu1 %v2494_v20 }
  0x2d   :  { %197 = vperm.xlu1 %2422, %v178_v59   ;;  %194 = vperm.xlu0 %2421, %v177_v60   ;;  %v3139_v59 = vrot.slane %v44_v47, %v215_v52 }
  0x2f   :  { %916 = vmatpush1.bf16.msra.mxu0 %v2458_v61  ;;  %518 = vmatpush1.bf16.msra.mxu1 %v2496_v24 }
  0x30   :  { %917 = vmatprep.subr.bf16.mxu0 %v2459_v2  ;;  %576 = vmatprep.subr.bf16.mxu1 %v2499_v26 }
  0x31   :  { %257 = vperm.xlu1 %2422, %v238_v4   ;;  %254 = vperm.xlu0 %2421, %v237_v5  }
  0x33   :  { %918 = vmatpush1.bf16.msra.mxu0 %v2461_v7 }
  0x34   :  { %919 = vmatprep.subr.bf16.mxu0 %v2462_v11 }
  0x35   :  { %83 = vperm.xlu1 %2422, %v60_v9   ;;  %80 = vperm.xlu0 %2421, %v59_v10   ;;  %v2502_v10 = vld [vmem:[%s3941_s5 + $0x2c] ss:$16 sps:$4 sm:$0xff]  }
  0x37   :  { %920 = vmatpush1.bf16.msra.mxu0 %v2464_v13  ;;  %v3163_v13 = vld [vmem:[%s3942_s6 + $0xe4] ss:$16 sps:$4 sm:$0xff]  }
  0x38   :  { %921 = vmatprep.subr.bf16.mxu0 %v2465_v17 }
  0x39   :  { %143 = vperm.xlu1 %2422, %v120_v15   ;;  %140 = vperm.xlu0 %2421, %v119_v16   ;;  %v3172_v15 = vld [vmem:[%s3942_s6 + $0xe0] ss:$16 sps:$4 sm:$0xff]   ;;  %v2505_v16 = vld [vmem:[%s3941_s5 + $0x4c] ss:$16 sps:$4 sm:$0xff]  }
  0x3b   :  { %922 = vmatpush1.bf16.msra.mxu0 %v2467_v19 }
  0x3c   :  { %923 = vmatprep.subr.bf16.mxu0 %v2468_v23 }
  0x3d   :  { %203 = vperm.xlu1 %2422, %v180_v21   ;;  %200 = vperm.xlu0 %2421, %v179_v22   ;;  %v2503_v21 = vld [vmem:[%s3941_s5 + $0x48] ss:$16 sps:$4 sm:$0xff]   ;;  %v2508_v22 = vld [vmem:[%s3941_s5 + $0x6c] ss:$16 sps:$4 sm:$0xff]  }
  0x3f   :  { %924 = vmatpush1.bf16.msra.mxu0 %v2470_v25 }
  0x40   :  { %1253 = vmatprep.subr.bf16.mxu0 %v3035_v30 }
  0x41   :  { %263 = vperm.xlu1 %2422, %v240_v27   ;;  %260 = vperm.xlu0 %2421, %v239_v28   ;;  %v2506_v27 = vld [vmem:[%s3941_s5 + $0x68] ss:$16 sps:$4 sm:$0xff]  }
  0x42   :  { %926 = vmatmul.mubr.bf16.vlgmr.msra.gmra.mrb[0].mxu0 %v2285_v29 }
  0x43   :  { %1285 = vmatprep.mubr.bf16.mxu0 %v3949_v0  ;;  %1254 = vmatpush1.bf16.msra.mxu0 %v3040_v31 }
  0x44   :  { %1255 = vmatprep.subr.bf16.mxu0 %v3045_v32 }
  0x47   :  { %1256 = vmatpush1.bf16.msra.mxu0 %v3053_v33 }
  0x48   :  { %1257 = vmatprep.subr.bf16.mxu0 %v3058_v34 }
  0x4b   :  { %1258 = vmatpush1.bf16.msra.mxu0 %v3065_v35 }
  0x4c   :  { %1259 = vmatprep.subr.bf16.mxu0 %v3070_v36 }
  0x4f   :  { %1260 = vmatpush1.bf16.msra.mxu0 %v3075_v37 }
  0x50   :  { %1261 = vmatprep.subr.bf16.mxu0 %v3081_v38 }
  0x53   :  { %1262 = vmatpush1.bf16.msra.mxu0 %v3089_v39 }
  0x54   :  { %1263 = vmatprep.subr.bf16.mxu0 %v3094_v40 }
  0x57   :  { %1264 = vmatpush1.bf16.msra.mxu0 %v3101_v42 }
  0x58   :  { %1265 = vmatprep.subr.bf16.mxu0 %v3106_v43 }
  0x5b   :  { %1266 = vmatpush1.bf16.msra.mxu0 %v3115_v45 }
  0x5c   :  { %1267 = vmatprep.subr.bf16.mxu0 %v3163_v13 }
  0x5f   :  { %1268 = vmatpush1.bf16.msra.mxu0 %v3172_v15 }
  0x60   :  { %1373 = vmatprep.subr.bf16.mxu0 %v3035_v30 }
  0x84   :  { %v123_v48 = vpop.permute.xlu1 %122  ;;  %v63_v50 = vpop.permute.xlu0 %62 }
  0x85   :  { %vm85_vm0 = vcmp.eq.s32.totalorder %v63_v50, 1  ;;  %vm145_vm1 = vcmp.eq.s32.totalorder %v123_v48, 1 }
  0x86   :  { %v97_v56 = vsel %vm85_vm0, %v3128_v51, 0.0 }
  0x87   :  { %v157_v60 = vsel %vm145_vm1, %v3132_v53, %v97_v56 }
  0x88   :  { %v126_v54 = vpop.permute.xlu1 %125  ;;  %v66_v55 = vpop.permute.xlu0 %65 }
  0x89   :  { %vm146_vm2 = vcmp.eq.s32.totalorder %v126_v54, 1  ;;  %vm86_vm3 = vcmp.eq.s32.totalorder %v66_v55, 1  ;;  %v2509_v55 = vld [vmem:[%s3941_s5 + $0x88] ss:$16 sps:$4 sm:$0xff]  }
  0x8a   :  { %v98_v57 = vsel %vm86_vm3, %v3128_v51, 0.0 }
  0x8b   :  { %v158_v61 = vsel %vm146_vm2, %v3132_v53, %v98_v57  ;;  %v2514_v57 = vld [vmem:[%s3941_s5 + $0xac] ss:$16 sps:$4 sm:$0xff]  }
  0x8c   :  { %v186_v62 = vpop.permute.xlu1 %185  ;;  %v183_v63 = vpop.permute.xlu0 %182 }
  0x8d   :  { %vm206_vm4 = vcmp.eq.s32.totalorder %v186_v62, 1  ;;  %vm205_vm5 = vcmp.eq.s32.totalorder %v183_v63, 1  ;;  %v2512_v62 = vld [vmem:[%s3941_s5 + $0xa8] ss:$16 sps:$4 sm:$0xff]   ;;  %v2517_v63 = vld [vmem:[%s3941_s5 + $0xcc] ss:$16 sps:$4 sm:$0xff]  }
  0x8e   :  { %v218_v2 = vsel %vm206_vm4, %v3139_v59, %v158_v61  ;;  %v217_v3 = vsel %vm205_vm5, %v3139_v59, %v157_v60 }
  0x90   :  { %v246_v4 = vpop.permute.xlu1 %245  ;;  %v243_v5 = vpop.permute.xlu0 %242 }
  0x91   :  { %vm266_vm6 = vcmp.eq.s32.totalorder %v246_v4, 1  ;;  %vm265_vm7 = vcmp.eq.s32.totalorder %v243_v5, 1 }
  0x92   :  { %v278_v6 = vsel %vm266_vm6, %v3145_v1, %v218_v2  ;;  %v277_v7 = vsel %vm265_vm7, %v3145_v1, %v217_v3 }
  0x93   :  { %v3154_v9 = vpack.c.bf16 %v278_v6, %v277_v7  ;;  %v2515_v6 = vld [vmem:[%s3941_s5 + $0xc8] ss:$16 sps:$4 sm:$0xff]   ;;  %v2520_v7 = vld [vmem:[%s3941_s5 + $0xec] ss:$16 sps:$4 sm:$0xff]  }
  0x94   :  { %v72_v11 = vpop.permute.xlu1 %71  ;;  %v69_v12 = vpop.permute.xlu0 %68 }
  0x95   :  { %536 = vmatmul.mubr.bf16.vlgmr.msra.gmra.mrb[0].mxu1 %v3154_v9  ;;  %vm88_vm8 = vcmp.eq.s32.totalorder %v72_v11, 1  ;;  %vm87_vm9 = vcmp.eq.s32.totalorder %v69_v12, 1 }
  0x96   :  { %545 = vmatprep.mubr.bf16.mxu1 %v3949_v0  ;;  %577 = vmatpush1.bf16.msra.mxu1 %v2497_v8  ;;  %v100_v19 = vsel %vm88_vm8, %v3128_v51, 0.0  ;;  %v99_v20 = vsel %vm87_vm9, %v3128_v51, 0.0 }
  0x97   :  { %578 = vmatprep.subr.bf16.mxu1 %v2502_v10 }
  0x98   :  { %v132_v17 = vpop.permute.xlu1 %131  ;;  %v129_v18 = vpop.permute.xlu0 %128 }
  0x99   :  { %vm148_vm10 = vcmp.eq.s32.totalorder %v132_v17, 1  ;;  %vm147_vm11 = vcmp.eq.s32.totalorder %v129_v18, 1 }
  0x9a   :  { %579 = vmatpush1.bf16.msra.mxu1 %v2500_v14  ;;  %v160_v23 = vsel %vm148_vm10, %v3132_v53, %v100_v19  ;;  %v159_v24 = vsel %vm147_vm11, %v3132_v53, %v99_v20  ;;  %v2518_v14 = vld [vmem:[%s3941_s5 + $0xe8] ss:$16 sps:$4 sm:$0xff]  }
  0x9b   :  { %580 = vmatprep.subr.bf16.mxu1 %v2505_v16 }
  0x9c   :  { %v192_v25 = vpop.permute.xlu1 %191  ;;  %v189_v26 = vpop.permute.xlu0 %188 }
  0x9d   :  { %vm208_vm12 = vcmp.eq.s32.totalorder %v192_v25, 1  ;;  %vm207_vm13 = vcmp.eq.s32.totalorder %v189_v26, 1 }
  0x9e   :  { %581 = vmatpush1.bf16.msra.mxu1 %v2503_v21  ;;  %v220_v28 = vsel %vm208_vm12, %v3139_v59, %v160_v23  ;;  %v219_v29 = vsel %vm207_vm13, %v3139_v59, %v159_v24 }
  0x9f   :  { %582 = vmatprep.subr.bf16.mxu1 %v2508_v22 }
  0xa0   :  { %v252_v47 = vpop.permute.xlu1 %251  ;;  %v249_v48 = vpop.permute.xlu0 %248 }
  0xa1   :  { %vm268_vm14 = vcmp.eq.s32.totalorder %v252_v47, 1  ;;  %vm267_vm15 = vcmp.eq.s32.totalorder %v249_v48, 1 }
  0xa2   :  { %v280_v50 = vsel %vm268_vm14, %v3145_v1, %v220_v28  ;;  %v279_v54 = vsel %vm267_vm15, %v3145_v1, %v219_v29  ;;  %583 = vmatpush1.bf16.msra.mxu1 %v2506_v27 }
  0xa3   :  { %v3203_v56 = vpack.c.bf16 %v280_v50, %v279_v54  ;;  %584 = vmatprep.subr.bf16.mxu1 %v2511_v41 }
  0xa4   :  { %v78_v60 = vpop.permute.xlu1 %77  ;;  %v75_v61 = vpop.permute.xlu0 %74 }
  0xa5   :  { %546 = vmatmul.mubr.bf16.gmra.mrb[4].mxu1 %v3203_v56  ;;  %vm90_vm0 = vcmp.eq.s32.totalorder %v78_v60, 1  ;;  %vm89_vm1 = vcmp.eq.s32.totalorder %v75_v61, 1 }
  0xa6   :  { %555 = vmatprep.mubr.bf16.mxu1 %v3949_v0  ;;  %585 = vmatpush1.bf16.msra.mxu1 %v2509_v55  ;;  %v102_v4 = vsel %vm90_vm0, %v3128_v51, 0.0  ;;  %v101_v5 = vsel %vm89_vm1, %v3128_v51, 0.0  ;;  %vm2233_vm0 = vcmask 31744  }
  0xa7   :  { %586 = vmatprep.subr.bf16.mxu1 %v2514_v57 }
  0xa8   :  { %v138_v2 = vpop.permute.xlu1 %137  ;;  %v135_v3 = vpop.permute.xlu0 %134 }
  0xa9   :  { %vm150_vm2 = vcmp.eq.s32.totalorder %v138_v2, 1  ;;  %vm149_vm3 = vcmp.eq.s32.totalorder %v135_v3, 1 }
  0xaa   :  { %587 = vmatpush1.bf16.msra.mxu1 %v2512_v62  ;;  %v162_v8 = vsel %vm150_vm2, %v3132_v53, %v102_v4  ;;  %v161_v10 = vsel %vm149_vm3, %v3132_v53, %v101_v5  ;;  %v3281_v4 = vld [vmem:[%s3942_s6 + $0x8] ss:$16 sps:$4 sm:$0xff]  }
  0xab   :  { %588 = vmatprep.subr.bf16.mxu1 %v2517_v63 }
  0xac   :  { %v198_v11 = vpop.permute.xlu1 %197  ;;  %v195_v12 = vpop.permute.xlu0 %194 }
  0xad   :  { %vm210_vm4 = vcmp.eq.s32.totalorder %v198_v11, 1  ;;  %vm209_vm5 = vcmp.eq.s32.totalorder %v195_v12, 1  ;;  %v3305_v11 = vld [vmem:[%s3942_s6 + $0x48] ss:$16 sps:$4 sm:$0xff]   ;;  %v3311_v12 = vld [vmem:[%s3942_s6 + $0x6c] ss:$16 sps:$4 sm:$0xff]  }
  0xae   :  { %589 = vmatpush1.bf16.msra.mxu1 %v2515_v6  ;;  %v222_v16 = vsel %vm210_vm4, %v3139_v59, %v162_v8  ;;  %v221_v17 = vsel %vm209_vm5, %v3139_v59, %v161_v10  ;;  %v3292_v8 = vld [vmem:[%s3942_s6 + $0x28] ss:$16 sps:$4 sm:$0xff]   ;;  %v3299_v10 = vld [vmem:[%s3942_s6 + $0x4c] ss:$16 sps:$4 sm:$0xff]  }
  0xaf   :  { %590 = vmatprep.subr.bf16.mxu1 %v2520_v7  ;;  %v3286_v7 = vld [vmem:[%s3942_s6 + $0x2c] ss:$16 sps:$4 sm:$0xff]  }
  0xb0   :  { %v258_v18 = vpop.permute.xlu1 %257  ;;  %v255_v19 = vpop.permute.xlu0 %254 }
  0xb1   :  { %vm270_vm6 = vcmp.eq.s32.totalorder %v258_v18, 1  ;;  %vm269_vm7 = vcmp.eq.s32.totalorder %v255_v19, 1  ;;  %v3335_v18 = vld [vmem:[%s3942_s6 + $0xac] ss:$16 sps:$4 sm:$0xff]   ;;  %v3341_v19 = vld [vmem:[%s3942_s6 + $0xa8] ss:$16 sps:$4 sm:$0xff]  }
  0xb2   :  { %v282_v20 = vsel %vm270_vm6, %v3145_v1, %v222_v16  ;;  %v281_v21 = vsel %vm269_vm7, %v3145_v1, %v221_v17  ;;  %591 = vmatpush1.bf16.msra.mxu1 %v2518_v14  ;;  %v3317_v14 = vld [vmem:[%s3942_s6 + $0x68] ss:$16 sps:$4 sm:$0xff]   ;;  %v3323_v16 = vld [vmem:[%s3942_s6 + $0x8c] ss:$16 sps:$4 sm:$0xff]  }
  0xb3   :  { %v287_v22 = vpack.c.bf16 %v282_v20, %v281_v21  ;;  %1134 = vmatprep.subr.bf16.mxu1 %v3035_v30  ;;  %v3329_v17 = vld [vmem:[%s3942_s6 + $0x88] ss:$16 sps:$4 sm:$0xff]   ;;  %v3347_v20 = vld [vmem:[%s3942_s6 + $0xcc] ss:$16 sps:$4 sm:$0xff]  }
  0xb4   :  { %v84_v23 = vpop.permute.xlu1 %83  ;;  %v81_v24 = vpop.permute.xlu0 %80  ;;  %v3353_v21 = vld [vmem:[%s3942_s6 + $0xc8] ss:$16 sps:$4 sm:$0xff]  }
  0xb5   :  { %556 = vmatmul.mubr.bf16.gmra.mrb[8].mxu1 %v287_v22  ;;  %vm92_vm8 = vcmp.eq.s32.totalorder %v84_v23, 1  ;;  %vm91_vm9 = vcmp.eq.s32.totalorder %v81_v24, 1  ;;  %v3365_v23 = vld [vmem:[%s3942_s6 + $0xe8] ss:$16 sps:$4 sm:$0xff]   ;;  %v321_v24 = vld [vmem:[%s3945_s7] sm:$0xf] }
  0xb6   :  { %565 = vmatprep.mubr.bf16.mxu1 %v3949_v0  ;;  %v104_v29 = vsel %vm92_vm8, %v3128_v51, 0.0  ;;  %v103_v41 = vsel %vm91_vm9, %v3128_v51, 0.0  ;;  %v3267_v51 = vld [vmem:[%s3942_s6 + $0xc] ss:$16 sps:$4 sm:$0xff]  }
  0xb8   :  { %v144_v25 = vpop.permute.xlu1 %143  ;;  %v141_v26 = vpop.permute.xlu0 %140 }
  0xb9   :  { %vm152_vm10 = vcmp.eq.s32.totalorder %v144_v25, 1  ;;  %vm151_vm11 = vcmp.eq.s32.totalorder %v141_v26, 1  ;;  %v3391_v25 = vrot.slane %v321_v24, %v3118_v46 }
  0xba   :  { %v164_v47 = vsel %vm152_vm10, %v3132_v53, %v104_v29  ;;  %v163_v48 = vsel %vm151_vm11, %v3132_v53, %v103_v41  ;;  %v714_v53 = vld [vmem:[%s3944_s4] sm:$0x3] }
  0xbc   :  { %v204_v27 = vpop.permute.xlu1 %203  ;;  %v201_v28 = vpop.permute.xlu0 %200 }
  0xbd   :  { %vm212_vm12 = vcmp.eq.s32.totalorder %v204_v27, 1  ;;  %vm211_vm13 = vcmp.eq.s32.totalorder %v201_v28, 1  ;;  %v3396_v27 = vrot.slane %v321_v24, %v3125_v49 }
  0xbe   :  { %v224_v55 = vsel %vm212_vm12, %v3139_v59, %v164_v47  ;;  %v223_v57 = vsel %vm211_vm13, %v3139_v59, %v163_v48  ;;  %v719_v59 = vrot.slane %v714_v53, %v3118_v46 }
  0xc0   :  { %v264_v50 = vpop.permute.xlu1 %263  ;;  %v261_v54 = vpop.permute.xlu0 %260 }
  0xc1   :  { %vm272_vm14 = vcmp.eq.s32.totalorder %v264_v50, 1  ;;  %vm271_vm15 = vcmp.eq.s32.totalorder %v261_v54, 1 }
  0xc2   :  { %v284_v60 = vsel %vm272_vm14, %v3145_v1, %v224_v55  ;;  %v283_v61 = vsel %vm271_vm15, %v3145_v1, %v223_v57  ;;  %v723_v1 = vrot.slane %v714_v53, %v3125_v49 }
  0xc3   :  { %v288_v62 = vpack.c.bf16 %v284_v60, %v283_v61 }
  0xc5   :  { %566 = vmatmul.mubr.bf16.gmra.mrb[12].mxu1 %v288_v62 }
  0xc6   :  { %608 = vmatprep.mubr.bf16.mxu1 %v3949_v0 }
  0xcd   :  { %609 = vmatmul.mubr.bf16.vlgmr.msra.gmra.mrb[16].mxu1 %v3154_v9 }
  0xce   :  { %618 = vmatprep.mubr.bf16.mxu1 %v3949_v0  ;;  %1135 = vmatpush1.bf16.msra.mxu1 %v3040_v31 }
  0xcf   :  { %1136 = vmatprep.subr.bf16.mxu1 %v3045_v32 }
  0xd2   :  { %1137 = vmatpush1.bf16.msra.mxu1 %v3053_v33 }
  0xd3   :  { %1138 = vmatprep.subr.bf16.mxu1 %v3058_v34 }
  0xd5   :  { %619 = vmatmul.mubr.bf16.gmra.mrb[20].mxu1 %v3203_v56 }
  0xd6   :  { %628 = vmatprep.mubr.bf16.mxu1 %v3949_v0  ;;  %1139 = vmatpush1.bf16.msra.mxu1 %v3065_v35 }
  0xd7   :  { %1140 = vmatprep.subr.bf16.mxu1 %v3070_v36 }
  0xda   :  { %1141 = vmatpush1.bf16.msra.mxu1 %v3075_v37 }
  0xdb   :  { %1142 = vmatprep.subr.bf16.mxu1 %v3081_v38 }
  0xdd   :  { %629 = vmatmul.mubr.bf16.gmra.mrb[24].mxu1 %v287_v22  ;;  %v3359_v22 = vld [vmem:[%s3942_s6 + $0xec] ss:$16 sps:$4 sm:$0xff]  }
  0xde   :  { %638 = vmatprep.mubr.bf16.mxu1 %v3949_v0  ;;  %1143 = vmatpush1.bf16.msra.mxu1 %v3089_v39 }
  0xdf   :  { %1144 = vmatprep.subr.bf16.mxu1 %v3094_v40 }
  0xe2   :  { %1145 = vmatpush1.bf16.msra.mxu1 %v3101_v42 }
  0xe3   :  { %1146 = vmatprep.subr.bf16.mxu1 %v3106_v43 }
  0xe5   :  { %639 = vmatmul.mubr.bf16.gmra.mrb[28].mxu1 %v288_v62 }
  0xe6   :  { %1147 = vmatpush1.bf16.msra.mxu1 %v3115_v45  ;;  %1166 = vmatprep.mubr.bf16.mxu1 %v3949_v0 }
  0xe7   :  { %1148 = vmatprep.subr.bf16.mxu1 %v3163_v13 }
  0xea   :  { %1149 = vmatpush1.bf16.msra.mxu1 %v3172_v15 }
  0xeb   :  { %1175 = vmatprep.subr.bf16.mxu1 %v3267_v51 }
 0x115   :  { %v927_v9 = vpop.f32.mrb[0].mxu0 }
 0x116   :  { %v928_v56 = vadd.f32 %v927_v9, %v719_v59  ;;  %v929_v63 = vpop.f32.mrb[1].mxu0 }
 0x117   :  { %v3276_v2 = vadd.f32 %v929_v63, %v723_v1  ;;  %v931_v3 = vpop.f32.mrb[2].mxu0 }
 0x118   :  { %v973_v5 = vpack.c.bf16 %v928_v56, %v928_v56  ;;  %v932_v6 = vpop.f32.mrb[3].mxu0 }
 0x11a   :  { %1167 = vmatmul.mubr.bf16.vlgmr.msra.gmra.mrb[32].mxu1 %v973_v5 }
 0x11b   :  { %1176 = vmatpush1.bf16.msra.mxu1 %v3281_v4  ;;  %1207 = vmatprep.mubr.bf16.mxu1 %v3949_v0 }
 0x11c   :  { %1177 = vmatprep.subr.bf16.mxu1 %v3286_v7 }
 0x11f   :  { %1178 = vmatpush1.bf16.msra.mxu1 %v3292_v8 }
 0x120   :  { %1179 = vmatprep.subr.bf16.mxu1 %v3299_v10 }
 0x123   :  { %1180 = vmatpush1.bf16.msra.mxu1 %v3305_v11 }
 0x124   :  { %1181 = vmatprep.subr.bf16.mxu1 %v3311_v12 }
 0x127   :  { %1182 = vmatpush1.bf16.msra.mxu1 %v3317_v14 }
 0x128   :  { %1183 = vmatprep.subr.bf16.mxu1 %v3323_v16 }
 0x12b   :  { %1184 = vmatpush1.bf16.msra.mxu1 %v3329_v17 }
 0x12c   :  { %1185 = vmatprep.subr.bf16.mxu1 %v3335_v18 }
 0x12f   :  { %1186 = vmatpush1.bf16.msra.mxu1 %v3341_v19 }
 0x130   :  { %1187 = vmatprep.subr.bf16.mxu1 %v3347_v20 }
 0x133   :  { %1188 = vmatpush1.bf16.msra.mxu1 %v3353_v21 }
 0x134   :  { %1189 = vmatprep.subr.bf16.mxu1 %v3359_v22 }
 0x137   :  { %1190 = vmatpush1.bf16.msra.mxu1 %v3365_v23 }
 0x138   :  { %1294 = vmatprep.subr.bf16.mxu1 %v3267_v51 }
 0x13a   :  { %1208 = vmatmul.mubr.bf16.vlgmr.msra.gmra.mrb[36].mxu1 %v973_v5 }
 0x13b   :  { %1295 = vmatpush1.bf16.msra.mxu1 %v3281_v4  ;;  %1326 = vmatprep.mubr.bf16.mxu1 %v3949_v0 }
 0x13c   :  { %1296 = vmatprep.subr.bf16.mxu1 %v3286_v7 }
 0x13f   :  { %1297 = vmatpush1.bf16.msra.mxu1 %v3292_v8 }
 0x140   :  { %1298 = vmatprep.subr.bf16.mxu1 %v3299_v10 }
 0x143   :  { %1299 = vmatpush1.bf16.msra.mxu1 %v3305_v11 }
 0x144   :  { %1300 = vmatprep.subr.bf16.mxu1 %v3311_v12 }
 0x147   :  { %1301 = vmatpush1.bf16.msra.mxu1 %v3317_v14 }
 0x148   :  { %1302 = vmatprep.subr.bf16.mxu1 %v3323_v16 }
 0x14b   :  { %1303 = vmatpush1.bf16.msra.mxu1 %v3329_v17 }
 0x14c   :  { %1304 = vmatprep.subr.bf16.mxu1 %v3335_v18 }
 0x14f   :  { %1305 = vmatpush1.bf16.msra.mxu1 %v3341_v19 }
 0x150   :  { %1306 = vmatprep.subr.bf16.mxu1 %v3347_v20 }
 0x153   :  { %1307 = vmatpush1.bf16.msra.mxu1 %v3353_v21 }
 0x154   :  { %1308 = vmatprep.subr.bf16.mxu1 %v3359_v22 }
 0x157   :  { %1309 = vmatpush1.bf16.msra.mxu1 %v3365_v23 }
 0x158   :  { %1414 = vmatprep.subr.bf16.mxu1 %v3267_v51 }
 0x168   :  { %v3393_v26 = vpop.f32.mrb[0].mxu1 }
 0x169   :  { %v539_v28 = vpop.f32.mrb[1].mxu1 }
 0x16a   :  { %v541_v29 = vpop.f32.mrb[2].mxu1 }
 0x16b   :  { %v3399_v41 = vadd.f32 %v541_v29, %v3391_v25  ;;  %v543_v47 = vpop.f32.mrb[3].mxu1 }
 0x16c   :  { %v3402_v48 = vadd.f32 %v543_v47, %v3396_v27 }
 0x178   :  { %v547_v50 = vpop.f32.mrb[4].mxu1 }
 0x179   :  { %v3405_v54 = vadd.f32 %v547_v50, %v3391_v25  ;;  %v549_v46 = vpop.f32.mrb[5].mxu1 }
 0x17a   :  { %v3408_v55 = vadd.f32 %v549_v46, %v3396_v27  ;;  %v551_v57 = vpop.f32.mrb[6].mxu1 }
 0x17b   :  { %v3411_v49 = vadd.f32 %v551_v57, %v3391_v25  ;;  %v553_v60 = vpop.f32.mrb[7].mxu1 }
 0x17c   :  { %v3414_v61 = vadd.f32 %v553_v60, %v3396_v27 }
 0x17d   :  { %3951 = vst [vmem:[#allocation4_spill] sm:$0xff] %v3411_v49 }
 0x17e   :  { %3952 = vst [vmem:[#allocation5_spill] sm:$0xff] %v3414_v61 }
 0x188   :  { %v557_v62 = vpop.f32.mrb[8].mxu1 }
 0x189   :  { %v3417_v53 = vadd.f32 %v557_v62, %v3391_v25  ;;  %v559_v59 = vpop.f32.mrb[9].mxu1 }
 0x18a   :  { %v3420_v1 = vadd.f32 %v559_v59, %v3396_v27  ;;  %v561_v9 = vpop.f32.mrb[10].mxu1  ;;  %v334_v59 = vrot.slane %v321_v24, %v215_v52 }
 0x18b   :  { %3953 = vst [vmem:[#allocation6_spill] sm:$0xff] %v3417_v53  ;;  %v3423_v56 = vadd.f32 %v561_v9, %v3391_v25  ;;  %v563_v63 = vpop.f32.mrb[11].mxu1 }
 0x18c   :  { %3954 = vst [vmem:[#allocation7_spill] sm:$0xff] %v3420_v1  ;;  %v3426_v3 = vadd.f32 %v563_v63, %v3396_v27  ;;  %v338_v63 = vrot.slane %v321_v24, %v275_v58 }
 0x18d   :  { %3955 = vst [vmem:[#allocation8_spill] sm:$0xff] %v3423_v56 }
 0x18e   :  { %3956 = vst [vmem:[#allocation9_spill] sm:$0xff] %v3426_v3 }
 0x198   :  { %v567_v5 = vpop.f32.mrb[12].mxu1 }
 0x199   :  { %v3429_v6 = vadd.f32 %v567_v5, %v3391_v25  ;;  %v569_v29 = vpop.f32.mrb[13].mxu1 }
 0x19a   :  { %v3432_v47 = vadd.f32 %v569_v29, %v3396_v27  ;;  %v571_v50 = vpop.f32.mrb[14].mxu1 }
 0x19b   :  { %3957 = vst [vmem:[#allocation10_spill] sm:$0xff] %v3429_v6  ;;  %v3435_v46 = vadd.f32 %v571_v50, %v3391_v25  ;;  %v573_v57 = vpop.f32.mrb[15].mxu1 }
 0x19c   :  { %3958 = vst [vmem:[#allocation11_spill] sm:$0xff] %v3432_v47  ;;  %v3438_v60 = vadd.f32 %v573_v57, %v3396_v27 }
 0x19d   :  { %3959 = vst [vmem:[#allocation12_spill] sm:$0xff] %v3435_v46 }
 0x19e   :  { %3960 = vst [vmem:[#allocation13_spill] sm:$0xff] %v3438_v60 }
 0x1a0   :  { %v610_v62 = vpop.f32.mrb[16].mxu1 }
 0x1a1   :  { %v612_v9 = vpop.f32.mrb[17].mxu1 }
 0x1a2   :  { %v614_v5 = vpop.f32.mrb[18].mxu1 }
 0x1a3   :  { %v3444_v0 = vadd.f32 %v614_v5, %v334_v59  ;;  %v616_v29 = vpop.f32.mrb[19].mxu1 }
 0x1a4   :  { %v3446_v47 = vadd.f32 %v616_v29, %v338_v63 }
 0x1a8   :  { %v620_v50 = vpop.f32.mrb[20].mxu1 }
 0x1a9   :  { %v3448_v46 = vadd.f32 %v620_v50, %v334_v59  ;;  %v622_v6 = vpop.f32.mrb[21].mxu1 }
 0x1aa   :  { %v3450_v57 = vadd.f32 %v622_v6, %v338_v63  ;;  %v624_v60 = vpop.f32.mrb[22].mxu1 }
 0x1ab   :  { %v3452_v3 = vadd.f32 %v624_v60, %v334_v59  ;;  %v626_v52 = vpop.f32.mrb[23].mxu1 }
 0x1ac   :  { %v3454_v56 = vadd.f32 %v626_v52, %v338_v63 }
 0x1ad   :  { %3961 = vst [vmem:[#allocation14_spill] sm:$0xff] %v3452_v3 }
 0x1ae   :  { %3962 = vst [vmem:[#allocation15_spill] sm:$0xff] %v3454_v56 }
 0x1b0   :  { %v630_v44 = vpop.f32.mrb[24].mxu1 }
 0x1b1   :  { %v3456_v58 = vadd.f32 %v630_v44, %v334_v59  ;;  %v632_v24 = vpop.f32.mrb[25].mxu1 }
 0x1b2   :  { %v3458_v5 = vadd.f32 %v632_v24, %v338_v63  ;;  %v634_v29 = vpop.f32.mrb[26].mxu1  ;;  %v538_v24 = vadd.f32 %v3393_v26, %v3391_v25  ;;  %v611_v26 = vadd.f32 %v610_v62, %v334_v59 }
 0x1b3   :  { %3963 = vst [vmem:[#allocation16_spill] sm:$0xff] %v3456_v58  ;;  %v3460_v1 = vadd.f32 %v634_v29, %v334_v59  ;;  %v636_v50 = vpop.f32.mrb[27].mxu1  ;;  %v540_v29 = vadd.f32 %v539_v28, %v3396_v27  ;;  %v613_v27 = vadd.f32 %v612_v9, %v338_v63  ;;  %v3971_v9 = vmov 0  }
 0x1b4   :  { %3964 = vst [vmem:[#allocation17_spill] sm:$0xff] %v3458_v5  ;;  %v3462_v53 = vadd.f32 %v636_v50, %v338_v63 }
 0x1b5   :  { %3965 = vst [vmem:[#allocation18_spill] sm:$0xff] %v3460_v1 }
 0x1b6   :  { %3966 = vst [vmem:[#allocation19_spill] sm:$0xff] %v3462_v53 }
 0x1b8   :  { %v640_v6 = vpop.f32.mrb[28].mxu1 }
 0x1b9   :  { %v3464_v61 = vadd.f32 %v640_v6, %v334_v59  ;;  %v642_v60 = vpop.f32.mrb[29].mxu1 }
 0x1ba   :  { %v3466_v3 = vadd.f32 %v642_v60, %v338_v63  ;;  %v644_v52 = vpop.f32.mrb[30].mxu1 }
 0x1bb   :  { %3967 = vst [vmem:[#allocation20_spill] sm:$0xff] %v3464_v61  ;;  %v3468_v56 = vadd.f32 %v644_v52, %v334_v59  ;;  %v646_v44 = vpop.f32.mrb[31].mxu1 }
 0x1bc   :  { %3968 = vst [vmem:[#allocation21_spill] sm:$0xff] %v3466_v3  ;;  %v3470_v58 = vadd.f32 %v646_v44, %v338_v63 }
 0x1bd   :  { %3969 = vst [vmem:[#allocation22_spill] sm:$0xff] %v3468_v56 }
 0x1be   :  { %3970 = vst [vmem:[#allocation23_spill] sm:$0xff] %v3470_v58 }
 0x1ed   :  { %v1168_v1 = vpop.f32.mrb[32].mxu1 }
 0x1ee   :  { %v1216_v50 = vadd.f32 %v1168_v1, %v538_v24  ;;  %v1170_v53 = vpop.f32.mrb[33].mxu1 }
 0x1ef   :  { %v1217_v5 = vadd.f32 %v1170_v53, %v540_v29  ;;  %v1172_v6 = vpop.f32.mrb[34].mxu1 }
 0x1f0   :  { %v1173_v61 = vpop.f32.mrb[35].mxu1  ;;  %v2351_v60 = vmul.f32 -1.442695, %v1216_v50 }
 0x1f1   :  { %v2352_v49 = vmul.f32 -1.442695, %v1217_v5 }
 0x1f3   :  { %2577 = vpow2.f32 %v2352_v49 }
 0x1f4   :  { %2579 = vpow2.f32 %v2351_v60 }
 0x1fd   :  { %v2578_v3 = vpop.eup %2577 }
 0x1fe   :  { %v1227_v52 = vadd.f32 1.0, %v2578_v3  ;;  %v2580_v44 = vpop.eup %2579 }
 0x1ff   :  { %v1226_v56 = vadd.f32 1.0, %v2580_v44 }
 0x200   :  { %2581 = vrcp.f32 %v1227_v52 }
 0x201   :  { %2583 = vrcp.f32 %v1226_v56 }
 0x20a   :  { %v2582_v58 = vpop.eup %2581 }
 0x20b   :  { %v1239_v25 = vmul.f32 %v2582_v58, %v3276_v2  ;;  %v2584_v29 = vpop.eup %2583 }
 0x20d   :  { %v1209_v28 = vpop.f32.mrb[36].mxu1 }
 0x20e   :  { %v1218_v1 = vadd.f32 %v1209_v28, %v611_v26  ;;  %v1211_v24 = vpop.f32.mrb[37].mxu1 }
 0x20f   :  { %v1219_v53 = vadd.f32 %v1211_v24, %v613_v27  ;;  %v1213_v61 = vpop.f32.mrb[38].mxu1 }
 0x210   :  { %2585 = vtanh.f32 %v1218_v1  ;;  %v1214_v49 = vpop.f32.mrb[39].mxu1 }
 0x211   :  { %v2353_v5 = vmul.f32 -1.442695, %v1219_v53 }
 0x213   :  { %2587 = vpow2.f32 %v2353_v5 }
 0x21a   :  { %v2586_v3 = vpop.eup %2585 }
 0x21b   :  { %v1240_v50 = vmul.f32 %v2586_v3, %v2584_v29 }
 0x21d   :  { %v2588_v6 = vpop.eup %2587  ;;  %v3476_v60 = vadd.f32 %v1240_v50, %v1239_v25 }
 0x21e   :  { %v1236_v52 = vadd.f32 1.0, %v2588_v6 }
 0x21f   :  { %2589 = vtanh.f32 %v3476_v60 }
 0x220   :  { %2591 = vrcp.f32 %v1236_v52 }
 0x229   :  { %v2590_v2 = vpop.eup %2589 }
 0x22a   :  { %v2592_v62 = vpop.eup %2591 }
 0x22b   :  { %v3479_v59 = vmul.f32 %v2592_v62, %v2590_v2 }
 0x22d   :  { %v1252_v56 = vpack.c.bf16 %v3479_v59, %v3479_v59 }
 0x22f   :  { %1286 = vmatmul.mubr.bf16.vlgmr.msra.gmra.mrb[4].mxu0 %v1252_v56  ;;  %1327 = vmatmul.mubr.bf16.vlgmr.msra.gmra.mrb[40].mxu1 %v1252_v56 }
 0x230   :  { %1374 = vmatpush1.bf16.msra.mxu0 %v3040_v31  ;;  %1415 = vmatpush1.bf16.msra.mxu1 %v3281_v4 }
 0x231   :  { %1375 = vmatprep.subr.bf16.mxu0 %v3045_v32  ;;  %1416 = vmatprep.subr.bf16.mxu1 %v3286_v7 }
 0x232   :  { %1405 = vmatprep.mubr.bf16.mxu0 %v3971_v9  ;;  %1446 = vmatprep.mubr.bf16.mxu1 %v3971_v9 }
 0x234   :  { %1376 = vmatpush1.bf16.msra.mxu0 %v3053_v33  ;;  %1417 = vmatpush1.bf16.msra.mxu1 %v3292_v8 }
 0x235   :  { %1377 = vmatprep.subr.bf16.mxu0 %v3058_v34  ;;  %1418 = vmatprep.subr.bf16.mxu1 %v3299_v10 }
 0x238   :  { %1378 = vmatpush1.bf16.msra.mxu0 %v3065_v35  ;;  %1419 = vmatpush1.bf16.msra.mxu1 %v3305_v11 }
 0x239   :  { %1379 = vmatprep.subr.bf16.mxu0 %v3070_v36  ;;  %1420 = vmatprep.subr.bf16.mxu1 %v3311_v12 }
 0x23c   :  { %1380 = vmatpush1.bf16.msra.mxu0 %v3075_v37  ;;  %1421 = vmatpush1.bf16.msra.mxu1 %v3317_v14 }
 0x23d   :  { %1381 = vmatprep.subr.bf16.mxu0 %v3081_v38  ;;  %1422 = vmatprep.subr.bf16.mxu1 %v3323_v16 }
 0x240   :  { %1382 = vmatpush1.bf16.msra.mxu0 %v3089_v39  ;;  %1423 = vmatpush1.bf16.msra.mxu1 %v3329_v17 }
 0x241   :  { %1383 = vmatprep.subr.bf16.mxu0 %v3094_v40  ;;  %1424 = vmatprep.subr.bf16.mxu1 %v3335_v18 }
 0x244   :  { %1384 = vmatpush1.bf16.msra.mxu0 %v3101_v42  ;;  %1425 = vmatpush1.bf16.msra.mxu1 %v3341_v19 }
 0x245   :  { %1385 = vmatprep.subr.bf16.mxu0 %v3106_v43  ;;  %1426 = vmatprep.subr.bf16.mxu1 %v3347_v20 }
 0x248   :  { %1386 = vmatpush1.bf16.msra.mxu0 %v3115_v45  ;;  %1427 = vmatpush1.bf16.msra.mxu1 %v3353_v21 }
 0x249   :  { %1387 = vmatprep.subr.bf16.mxu0 %v3163_v13  ;;  %1428 = vmatprep.subr.bf16.mxu1 %v3359_v22 }
 0x24c   :  { %1388 = vmatpush1.bf16.msra.mxu0 %v3172_v15  ;;  %1429 = vmatpush1.bf16.msra.mxu1 %v3365_v23 }
 0x24d   :  { %1493 = vmatprep.subr.bf16.mxu0 %v3035_v30  ;;  %1534 = vmatprep.subr.bf16.mxu1 %v3267_v51 }
 0x302   :  { %v1287_v63 = vpop.f32.mrb[4].mxu0  ;;  %v1328_v58 = vpop.f32.mrb[40].mxu1 }
 0x303   :  { %v1335_v44 = vadd.f32 %v1287_v63, %v3399_v41  ;;  %v1337_v25 = vadd.f32 %v1328_v58, %v3444_v0  ;;  %v1289_v26 = vpop.f32.mrb[5].mxu0  ;;  %v1330_v27 = vpop.f32.mrb[41].mxu1 }
 0x304   :  { %v1336_v28 = vadd.f32 %v1289_v26, %v3402_v48  ;;  %v1338_v1 = vadd.f32 %v1330_v27, %v3446_v47  ;;  %v1291_v24 = vpop.f32.mrb[6].mxu0  ;;  %v1332_v53 = vpop.f32.mrb[42].mxu1 }
 0x305   :  { %v2354_v61 = vmul.f32 -1.442695, %v1335_v44  ;;  %v1292_v49 = vpop.f32.mrb[7].mxu0  ;;  %v1333_v5 = vpop.f32.mrb[43].mxu1 }
 0x306   :  { %v2355_v30 = vmul.f32 -1.442695, %v1336_v28  ;;  %v2356_v29 = vmul.f32 -1.442695, %v1338_v1 }
 0x307   :  { %2593 = vpow2.f32 %v2354_v61 }
 0x308   :  { %2595 = vpow2.f32 %v2355_v30 }
 0x309   :  { %2597 = vpow2.f32 %v2356_v29 }
 0x30a   :  { %2599 = vtanh.f32 %v1337_v25 }
 0x311   :  { %v2594_v3 = vpop.eup %2593 }
 0x312   :  { %v2596_v50 = vpop.eup %2595  ;;  %v1345_v41 = vadd.f32 1.0, %v2594_v3 }
 0x313   :  { %v1346_v0 = vadd.f32 1.0, %v2596_v50  ;;  %v2598_v48 = vpop.eup %2597 }
 0x314   :  { %2601 = vrcp.f32 %v1345_v41  ;;  %v2600_v6 = vpop.eup %2599  ;;  %v1355_v62 = vadd.f32 1.0, %v2598_v48  ;;  %v3583_v48 = vld [vmem:[%s3942_s6] ss:$16 sps:$4 sm:$0xff]  }
 0x315   :  { %2603 = vrcp.f32 %v1346_v0 }
 0x316   :  { %2605 = vrcp.f32 %v1355_v62  ;;  %v3620_v62 = vld [vmem:[%s3942_s6 + $0x64] ss:$16 sps:$4 sm:$0xff]  }
 0x31e   :  { %v2602_v47 = vpop.eup %2601 }
 0x31f   :  { %v2604_v52 = vpop.eup %2603  ;;  %v1359_v2 = vmul.f32 %v2602_v47, %v2600_v6  ;;  %v3590_v6 = vld [vmem:[%s3942_s6 + $0x24] ss:$16 sps:$4 sm:$0xff]   ;;  %v3599_v47 = vld [vmem:[%s3942_s6 + $0x20] ss:$16 sps:$4 sm:$0xff]  }
 0x320   :  { %v1358_v56 = vmul.f32 %v2604_v52, %v3476_v60  ;;  %v2606_v58 = vpop.eup %2605  ;;  %v3606_v52 = vld [vmem:[%s3942_s6 + $0x44] ss:$16 sps:$4 sm:$0xff]  }
 0x322   :  { %v3522_v63 = vadd.f32 %v1359_v2, %v1358_v56  ;;  %v3613_v2 = vld [vmem:[%s3942_s6 + $0x40] ss:$16 sps:$4 sm:$0xff]  }
 0x323   :  { %v3627_v56 = vld [vmem:[%s3942_s6 + $0x60] ss:$16 sps:$4 sm:$0xff]  }
 0x324   :  { %2607 = vtanh.f32 %v3522_v63 }
 0x32e   :  { %v2608_v44 = vpop.eup %2607 }
 0x32f   :  { %v3525_v26 = vmul.f32 %v2608_v44, %v2606_v58  ;;  %v3641_v58 = vld [vmem:[%s3942_s6 + $0x80] ss:$16 sps:$4 sm:$0xff]   ;;  %v3648_v44 = vld [vmem:[%s3942_s6 + $0xa4] ss:$16 sps:$4 sm:$0xff]  }
 0x331   :  { %v1372_v25 = vpack.c.bf16 %v3525_v26, %v3525_v26 }
 0x333   :  { %1406 = vmatmul.mubr.bf16.vlgmr.msra.gmra.mrb[8].mxu0 %v1372_v25  ;;  %1447 = vmatmul.mubr.bf16.vlgmr.msra.gmra.mrb[44].mxu1 %v1372_v25  ;;  %v3655_v25 = vld [vmem:[%s3942_s6 + $0xa0] ss:$16 sps:$4 sm:$0xff]  }
 0x334   :  { %1494 = vmatpush1.bf16.msra.mxu0 %v3040_v31  ;;  %1535 = vmatpush1.bf16.msra.mxu1 %v3281_v4  ;;  %v3564_v31 = vld [vmem:[%s3942_s6 + $0x4] ss:$16 sps:$4 sm:$0xff]  }
 0x335   :  { %1495 = vmatprep.subr.bf16.mxu0 %v3045_v32  ;;  %1536 = vmatprep.subr.bf16.mxu1 %v3286_v7 }
 0x336   :  { %1525 = vmatprep.mubr.bf16.mxu0 %v3971_v9  ;;  %1566 = vmatprep.mubr.bf16.mxu1 %v3971_v9 }
 0x338   :  { %1496 = vmatpush1.bf16.msra.mxu0 %v3053_v33  ;;  %1537 = vmatpush1.bf16.msra.mxu1 %v3292_v8 }
 0x339   :  { %1497 = vmatprep.subr.bf16.mxu0 %v3058_v34  ;;  %1538 = vmatprep.subr.bf16.mxu1 %v3299_v10 }
 0x33c   :  { %1498 = vmatpush1.bf16.msra.mxu0 %v3065_v35  ;;  %1539 = vmatpush1.bf16.msra.mxu1 %v3305_v11 }
 0x33d   :  { %1499 = vmatprep.subr.bf16.mxu0 %v3070_v36  ;;  %1540 = vmatprep.subr.bf16.mxu1 %v3311_v12 }
 0x340   :  { %1500 = vmatpush1.bf16.msra.mxu0 %v3075_v37  ;;  %1541 = vmatpush1.bf16.msra.mxu1 %v3317_v14 }
 0x341   :  { %1501 = vmatprep.subr.bf16.mxu0 %v3081_v38  ;;  %1542 = vmatprep.subr.bf16.mxu1 %v3323_v16 }
 0x344   :  { %1502 = vmatpush1.bf16.msra.mxu0 %v3089_v39  ;;  %1543 = vmatpush1.bf16.msra.mxu1 %v3329_v17 }
 0x345   :  { %1503 = vmatprep.subr.bf16.mxu0 %v3094_v40  ;;  %1544 = vmatprep.subr.bf16.mxu1 %v3335_v18 }
 0x348   :  { %1504 = vmatpush1.bf16.msra.mxu0 %v3101_v42  ;;  %1545 = vmatpush1.bf16.msra.mxu1 %v3341_v19 }
 0x349   :  { %1505 = vmatprep.subr.bf16.mxu0 %v3106_v43  ;;  %1546 = vmatprep.subr.bf16.mxu1 %v3347_v20 }
 0x34c   :  { %1506 = vmatpush1.bf16.msra.mxu0 %v3115_v45  ;;  %1547 = vmatpush1.bf16.msra.mxu1 %v3353_v21 }
 0x34d   :  { %1507 = vmatprep.subr.bf16.mxu0 %v3163_v13  ;;  %1548 = vmatprep.subr.bf16.mxu1 %v3359_v22 }
 0x350   :  { %1508 = vmatpush1.bf16.msra.mxu0 %v3172_v15  ;;  %1549 = vmatpush1.bf16.msra.mxu1 %v3365_v23 }
 0x351   :  { %1613 = vmatprep.subr.bf16.mxu0 %v3564_v31  ;;  %1654 = vmatprep.subr.bf16.mxu1 %v3267_v51 }
 0x406   :  { %v1407_v32 = vpop.f32.mrb[8].mxu0  ;;  %v1448_v33 = vpop.f32.mrb[44].mxu1 }
 0x407   :  { %v1455_v34 = vadd.f32 %v1407_v32, %v3405_v54  ;;  %v1457_v35 = vadd.f32 %v1448_v33, %v3448_v46  ;;  %v1409_v36 = vpop.f32.mrb[9].mxu0  ;;  %v1450_v37 = vpop.f32.mrb[45].mxu1  ;;  %v3662_v32 = vld [vmem:[%s3942_s6 + $0xc4] ss:$16 sps:$4 sm:$0xff]   ;;  %v3669_v33 = vld [vmem:[%s3942_s6 + $0xc0] ss:$16 sps:$4 sm:$0xff]  }
 0x408   :  { %v1456_v38 = vadd.f32 %v1409_v36, %v3408_v55  ;;  %v1458_v39 = vadd.f32 %v1450_v37, %v3450_v57  ;;  %v1411_v40 = vpop.f32.mrb[10].mxu0  ;;  %v1452_v42 = vpop.f32.mrb[46].mxu1  ;;  %v3972_v36 = vld [vmem:[#allocation4_spill] sm:$0xff] }
 0x409   :  { %v2357_v43 = vmul.f32 -1.442695, %v1455_v34  ;;  %v1412_v45 = vpop.f32.mrb[11].mxu0  ;;  %v1453_v60 = vpop.f32.mrb[47].mxu1 }
 0x40a   :  { %v2358_v27 = vmul.f32 -1.442695, %v1456_v38  ;;  %v2359_v28 = vmul.f32 -1.442695, %v1458_v39  ;;  %v3973_v38 = vld [vmem:[#allocation14_spill] sm:$0xff]  ;;  %v3975_v45 = vld [vmem:[#allocation15_spill] sm:$0xff] }
 0x40b   :  { %2609 = vpow2.f32 %v2357_v43  ;;  %v3974_v43 = vld [vmem:[#allocation5_spill] sm:$0xff] }
 0x40c   :  { %2611 = vpow2.f32 %v2358_v27 }
 0x40d   :  { %2613 = vpow2.f32 %v2359_v28 }
 0x40e   :  { %2615 = vtanh.f32 %v1457_v35 }
 0x415   :  { %v2610_v1 = vpop.eup %2609 }
 0x416   :  { %v2612_v24 = vpop.eup %2611  ;;  %v1465_v54 = vadd.f32 1.0, %v2610_v1 }
 0x417   :  { %v1466_v46 = vadd.f32 1.0, %v2612_v24  ;;  %v2614_v55 = vpop.eup %2613 }
 0x418   :  { %2617 = vrcp.f32 %v1465_v54  ;;  %v2616_v53 = vpop.eup %2615  ;;  %v1475_v5 = vadd.f32 1.0, %v2614_v55 }
 0x419   :  { %2619 = vrcp.f32 %v1466_v46 }
 0x41a   :  { %2621 = vrcp.f32 %v1475_v5 }
 0x422   :  { %v2618_v57 = vpop.eup %2617 }
 0x423   :  { %v2620_v61 = vpop.eup %2619  ;;  %v1479_v49 = vmul.f32 %v2618_v57, %v2616_v53 }
 0x424   :  { %v1478_v30 = vmul.f32 %v2620_v61, %v3522_v63  ;;  %v2622_v3 = vpop.eup %2621  ;;  %v3634_v63 = vld [vmem:[%s3942_s6 + $0x84] ss:$16 sps:$4 sm:$0xff]  }
 0x426   :  { %v3573_v29 = vadd.f32 %v1479_v49, %v1478_v30 }
 0x428   :  { %2623 = vtanh.f32 %v3573_v29 }
 0x432   :  { %v2624_v50 = vpop.eup %2623 }
 0x433   :  { %v3576_v41 = vmul.f32 %v2624_v50, %v2622_v3 }
 0x435   :  { %v1492_v0 = vpack.c.bf16 %v3576_v41, %v3576_v41 }
 0x437   :  { %1526 = vmatmul.mubr.bf16.vlgmr.msra.gmra.mrb[12].mxu0 %v1492_v0  ;;  %1567 = vmatmul.mubr.bf16.vlgmr.msra.gmra.mrb[48].mxu1 %v1492_v0 }
 0x438   :  { %1614 = vmatpush1.bf16.msra.mxu0 %v3583_v48  ;;  %1655 = vmatpush1.bf16.msra.mxu1 %v3281_v4 }
 0x439   :  { %1615 = vmatprep.subr.bf16.mxu0 %v3590_v6  ;;  %1656 = vmatprep.subr.bf16.mxu1 %v3286_v7 }
 0x43a   :  { %1645 = vmatprep.mubr.bf16.mxu0 %v3971_v9  ;;  %1686 = vmatprep.mubr.bf16.mxu1 %v3971_v9 }
 0x43c   :  { %1616 = vmatpush1.bf16.msra.mxu0 %v3599_v47  ;;  %1657 = vmatpush1.bf16.msra.mxu1 %v3292_v8 }
 0x43d   :  { %1617 = vmatprep.subr.bf16.mxu0 %v3606_v52  ;;  %1658 = vmatprep.subr.bf16.mxu1 %v3299_v10 }
 0x440   :  { %1618 = vmatpush1.bf16.msra.mxu0 %v3613_v2  ;;  %1659 = vmatpush1.bf16.msra.mxu1 %v3305_v11 }
 0x441   :  { %1619 = vmatprep.subr.bf16.mxu0 %v3620_v62  ;;  %1660 = vmatprep.subr.bf16.mxu1 %v3311_v12 }
 0x444   :  { %1620 = vmatpush1.bf16.msra.mxu0 %v3627_v56  ;;  %1661 = vmatpush1.bf16.msra.mxu1 %v3317_v14 }
 0x445   :  { %1621 = vmatprep.subr.bf16.mxu0 %v3634_v63  ;;  %1662 = vmatprep.subr.bf16.mxu1 %v3323_v16 }
 0x448   :  { %1622 = vmatpush1.bf16.msra.mxu0 %v3641_v58  ;;  %1663 = vmatpush1.bf16.msra.mxu1 %v3329_v17 }
 0x449   :  { %1623 = vmatprep.subr.bf16.mxu0 %v3648_v44  ;;  %1664 = vmatprep.subr.bf16.mxu1 %v3335_v18 }
 0x44c   :  { %1624 = vmatpush1.bf16.msra.mxu0 %v3655_v25  ;;  %1665 = vmatpush1.bf16.msra.mxu1 %v3341_v19 }
 0x44d   :  { %1625 = vmatprep.subr.bf16.mxu0 %v3662_v32  ;;  %1666 = vmatprep.subr.bf16.mxu1 %v3347_v20 }
 0x450   :  { %1626 = vmatpush1.bf16.msra.mxu0 %v3669_v33  ;;  %1667 = vmatpush1.bf16.msra.mxu1 %v3353_v21 }
 0x451   :  { %1627 = vmatprep.subr.bf16.mxu0 %v3163_v13  ;;  %1668 = vmatprep.subr.bf16.mxu1 %v3359_v22 }
 0x454   :  { %1628 = vmatpush1.bf16.msra.mxu0 %v3172_v15  ;;  %1669 = vmatpush1.bf16.msra.mxu1 %v3365_v23 }
 0x455   :  { %1733 = vmatprep.subr.bf16.mxu0 %v3564_v31  ;;  %1774 = vmatprep.subr.bf16.mxu1 %v3267_v51 }
 0x50a   :  { %v1527_v34 = vpop.f32.mrb[12].mxu0  ;;  %v1568_v35 = vpop.f32.mrb[48].mxu1 }
 0x50b   :  { %v1575_v37 = vadd.f32 %v1527_v34, %v3972_v36  ;;  %v1577_v39 = vadd.f32 %v1568_v35, %v3973_v38  ;;  %v1529_v40 = vpop.f32.mrb[13].mxu0  ;;  %v1570_v42 = vpop.f32.mrb[49].mxu1 }
 0x50c   :  { %v1576_v13 = vadd.f32 %v1529_v40, %v3974_v43  ;;  %v1578_v60 = vadd.f32 %v1570_v42, %v3975_v45  ;;  %v1531_v27 = vpop.f32.mrb[14].mxu0  ;;  %v1572_v15 = vpop.f32.mrb[50].mxu1  ;;  %v3729_v40 = vld [vmem:[%s3942_s6 + $0xe0] ss:$16 sps:$4 sm:$0xff]  }
 0x50d   :  { %v2360_v28 = vmul.f32 -1.442695, %v1575_v37  ;;  %v1532_v1 = vpop.f32.mrb[15].mxu0  ;;  %v1573_v24 = vpop.f32.mrb[51].mxu1 }
 0x50e   :  { %v2361_v54 = vmul.f32 -1.442695, %v1576_v13  ;;  %v2362_v46 = vmul.f32 -1.442695, %v1578_v60  ;;  %v3976_v13 = vld [vmem:[#allocation6_spill] sm:$0xff]  ;;  %v3977_v60 = vld [vmem:[#allocation16_spill] sm:$0xff] }
 0x50f   :  { %2625 = vpow2.f32 %v2360_v28  ;;  %v3978_v1 = vld [vmem:[#allocation7_spill] sm:$0xff] }
 0x510   :  { %2627 = vpow2.f32 %v2361_v54  ;;  %v3979_v54 = vld [vmem:[#allocation17_spill] sm:$0xff] }
 0x511   :  { %2629 = vpow2.f32 %v2362_v46 }
 0x512   :  { %2631 = vtanh.f32 %v1577_v39 }
 0x519   :  { %v2626_v55 = vpop.eup %2625 }
 0x51a   :  { %v2628_v53 = vpop.eup %2627  ;;  %v1585_v57 = vadd.f32 1.0, %v2626_v55 }
 0x51b   :  { %v1586_v61 = vadd.f32 1.0, %v2628_v53  ;;  %v2630_v49 = vpop.eup %2629 }
 0x51c   :  { %2633 = vrcp.f32 %v1585_v57  ;;  %v2632_v5 = vpop.eup %2631  ;;  %v1595_v0 = vadd.f32 1.0, %v2630_v49 }
 0x51d   :  { %2635 = vrcp.f32 %v1586_v61 }
 0x51e   :  { %2637 = vrcp.f32 %v1595_v0 }
 0x526   :  { %v2634_v30 = vpop.eup %2633 }
 0x527   :  { %v2636_v3 = vpop.eup %2635  ;;  %v1599_v50 = vmul.f32 %v2634_v30, %v2632_v5 }
 0x528   :  { %v1598_v34 = vmul.f32 %v2636_v3, %v3573_v29  ;;  %v2638_v36 = vpop.eup %2637  ;;  %v3722_v29 = vld [vmem:[%s3942_s6 + $0xe4] ss:$16 sps:$4 sm:$0xff]  }
 0x52a   :  { %v3684_v35 = vadd.f32 %v1599_v50, %v1598_v34 }
 0x52c   :  { %2639 = vtanh.f32 %v3684_v35 }
 0x536   :  { %v2640_v37 = vpop.eup %2639 }
 0x537   :  { %v3687_v38 = vmul.f32 %v2640_v37, %v2638_v36 }
 0x539   :  { %v1612_v39 = vpack.c.bf16 %v3687_v38, %v3687_v38 }
 0x53b   :  { %1646 = vmatmul.mubr.bf16.vlgmr.msra.gmra.mrb[16].mxu0 %v1612_v39  ;;  %1687 = vmatmul.mubr.bf16.vlgmr.msra.gmra.mrb[52].mxu1 %v1612_v39 }
 0x53c   :  { %1734 = vmatpush1.bf16.msra.mxu0 %v3583_v48  ;;  %1775 = vmatpush1.bf16.msra.mxu1 %v3281_v4 }
 0x53d   :  { %1735 = vmatprep.subr.bf16.mxu0 %v3590_v6  ;;  %1776 = vmatprep.subr.bf16.mxu1 %v3286_v7 }
 0x53e   :  { %1765 = vmatprep.mubr.bf16.mxu0 %v3971_v9  ;;  %1806 = vmatprep.mubr.bf16.mxu1 %v3971_v9 }
 0x540   :  { %1736 = vmatpush1.bf16.msra.mxu0 %v3599_v47  ;;  %1777 = vmatpush1.bf16.msra.mxu1 %v3292_v8 }
 0x541   :  { %1737 = vmatprep.subr.bf16.mxu0 %v3606_v52  ;;  %1778 = vmatprep.subr.bf16.mxu1 %v3299_v10 }
 0x544   :  { %1738 = vmatpush1.bf16.msra.mxu0 %v3613_v2  ;;  %1779 = vmatpush1.bf16.msra.mxu1 %v3305_v11 }
 0x545   :  { %1739 = vmatprep.subr.bf16.mxu0 %v3620_v62  ;;  %1780 = vmatprep.subr.bf16.mxu1 %v3311_v12 }
 0x548   :  { %1740 = vmatpush1.bf16.msra.mxu0 %v3627_v56  ;;  %1781 = vmatpush1.bf16.msra.mxu1 %v3317_v14 }
 0x549   :  { %1741 = vmatprep.subr.bf16.mxu0 %v3634_v63  ;;  %1782 = vmatprep.subr.bf16.mxu1 %v3323_v16 }
 0x54c   :  { %1742 = vmatpush1.bf16.msra.mxu0 %v3641_v58  ;;  %1783 = vmatpush1.bf16.msra.mxu1 %v3329_v17 }
 0x54d   :  { %1743 = vmatprep.subr.bf16.mxu0 %v3648_v44  ;;  %1784 = vmatprep.subr.bf16.mxu1 %v3335_v18 }
 0x550   :  { %1744 = vmatpush1.bf16.msra.mxu0 %v3655_v25  ;;  %1785 = vmatpush1.bf16.msra.mxu1 %v3341_v19 }
 0x551   :  { %1745 = vmatprep.subr.bf16.mxu0 %v3662_v32  ;;  %1786 = vmatprep.subr.bf16.mxu1 %v3347_v20 }
 0x554   :  { %1746 = vmatpush1.bf16.msra.mxu0 %v3669_v33  ;;  %1787 = vmatpush1.bf16.msra.mxu1 %v3353_v21 }
 0x555   :  { %1747 = vmatprep.subr.bf16.mxu0 %v3722_v29  ;;  %1788 = vmatprep.subr.bf16.mxu1 %v3359_v22 }
 0x558   :  { %1748 = vmatpush1.bf16.msra.mxu0 %v3729_v40  ;;  %1789 = vmatpush1.bf16.msra.mxu1 %v3365_v23 }
 0x559   :  { %1853 = vmatprep.subr.bf16.mxu0 %v3564_v31  ;;  %1894 = vmatprep.subr.bf16.mxu1 %v3267_v51 }
 0x60e   :  { %v1647_v42 = vpop.f32.mrb[16].mxu0  ;;  %v1688_v43 = vpop.f32.mrb[52].mxu1 }
 0x60f   :  { %v1695_v45 = vadd.f32 %v1647_v42, %v3976_v13  ;;  %v1697_v27 = vadd.f32 %v1688_v43, %v3977_v60  ;;  %v1649_v15 = vpop.f32.mrb[17].mxu0  ;;  %v1690_v28 = vpop.f32.mrb[53].mxu1 }
 0x610   :  { %v1696_v24 = vadd.f32 %v1649_v15, %v3978_v1  ;;  %v1698_v46 = vadd.f32 %v1690_v28, %v3979_v54  ;;  %v1651_v55 = vpop.f32.mrb[18].mxu0  ;;  %v1692_v53 = vpop.f32.mrb[54].mxu1 }
 0x611   :  { %v2363_v57 = vmul.f32 -1.442695, %v1695_v45  ;;  %v1652_v61 = vpop.f32.mrb[19].mxu0  ;;  %v1693_v49 = vpop.f32.mrb[55].mxu1 }
 0x612   :  { %v2364_v5 = vmul.f32 -1.442695, %v1696_v24  ;;  %v2365_v30 = vmul.f32 -1.442695, %v1698_v46 }
 0x613   :  { %2641 = vpow2.f32 %v2363_v57 }
 0x614   :  { %2643 = vpow2.f32 %v2364_v5 }
 0x615   :  { %2645 = vpow2.f32 %v2365_v30 }
 0x616   :  { %2647 = vtanh.f32 %v1697_v27 }
 0x61d   :  { %v2642_v3 = vpop.eup %2641 }
 0x61e   :  { %v2644_v50 = vpop.eup %2643  ;;  %v1705_v0 = vadd.f32 1.0, %v2642_v3 }
 0x61f   :  { %v1706_v34 = vadd.f32 1.0, %v2644_v50  ;;  %v2646_v36 = vpop.eup %2645 }
 0x620   :  { %2649 = vrcp.f32 %v1705_v0  ;;  %v2648_v37 = vpop.eup %2647  ;;  %v1715_v13 = vadd.f32 1.0, %v2646_v36 }
 0x621   :  { %2651 = vrcp.f32 %v1706_v34 }
 0x622   :  { %2653 = vrcp.f32 %v1715_v13 }
 0x62a   :  { %v2650_v39 = vpop.eup %2649 }
 0x62b   :  { %v2652_v42 = vpop.eup %2651  ;;  %v1719_v43 = vmul.f32 %v2650_v39, %v2648_v37 }
 0x62c   :  { %v1718_v45 = vmul.f32 %v2652_v42, %v3684_v35  ;;  %v2654_v15 = vpop.eup %2653  ;;  %v2721_v42 = vld [vmem:[%s3942_s6 + $0x8] ss:$16 sps:$4 sm:$0xff]  }
 0x62e   :  { %v3740_v60 = vadd.f32 %v1719_v43, %v1718_v45  ;;  %v2722_v43 = vld [vmem:[%s3942_s6 + $0x2c] ss:$16 sps:$4 sm:$0xff]  }
 0x630   :  { %2655 = vtanh.f32 %v3740_v60 }
 0x63a   :  { %v2656_v28 = vpop.eup %2655 }
 0x63b   :  { %v3743_v1 = vmul.f32 %v2656_v28, %v2654_v15  ;;  %v3985_v15 = vld [vmem:[#allocation20_spill] sm:$0xff] }
 0x63d   :  { %v1732_v27 = vpack.c.bf16 %v3743_v1, %v3743_v1 }
 0x63f   :  { %1766 = vmatmul.mubr.bf16.vlgmr.msra.gmra.mrb[20].mxu0 %v1732_v27  ;;  %1807 = vmatmul.mubr.bf16.vlgmr.msra.gmra.mrb[56].mxu1 %v1732_v27 }
 0x640   :  { %1854 = vmatpush1.bf16.msra.mxu0 %v3583_v48  ;;  %1895 = vmatpush1.bf16.msra.mxu1 %v3281_v4 }
 0x641   :  { %1855 = vmatprep.subr.bf16.mxu0 %v3590_v6  ;;  %1896 = vmatprep.subr.bf16.mxu1 %v3286_v7 }
 0x642   :  { %1885 = vmatprep.mubr.bf16.mxu0 %v3971_v9  ;;  %1926 = vmatprep.mubr.bf16.mxu1 %v3971_v9 }
 0x644   :  { %1856 = vmatpush1.bf16.msra.mxu0 %v3599_v47  ;;  %1897 = vmatpush1.bf16.msra.mxu1 %v3292_v8  ;;  %v3980_v8 = vld [vmem:[#allocation8_spill] sm:$0xff] }
 0x645   :  { %1857 = vmatprep.subr.bf16.mxu0 %v3606_v52  ;;  %1898 = vmatprep.subr.bf16.mxu1 %v3299_v10 }
 0x648   :  { %1858 = vmatpush1.bf16.msra.mxu0 %v3613_v2  ;;  %1899 = vmatpush1.bf16.msra.mxu1 %v3305_v11  ;;  %v3981_v11 = vld [vmem:[#allocation18_spill] sm:$0xff] }
 0x649   :  { %1859 = vmatprep.subr.bf16.mxu0 %v3620_v62  ;;  %1900 = vmatprep.subr.bf16.mxu1 %v3311_v12 }
 0x64c   :  { %1860 = vmatpush1.bf16.msra.mxu0 %v3627_v56  ;;  %1901 = vmatpush1.bf16.msra.mxu1 %v3317_v14 }
 0x64d   :  { %1861 = vmatprep.subr.bf16.mxu0 %v3634_v63  ;;  %1902 = vmatprep.subr.bf16.mxu1 %v3323_v16 }
 0x650   :  { %1862 = vmatpush1.bf16.msra.mxu0 %v3641_v58  ;;  %1903 = vmatpush1.bf16.msra.mxu1 %v3329_v17  ;;  %v3982_v17 = vld [vmem:[#allocation9_spill] sm:$0xff] }
 0x651   :  { %1863 = vmatprep.subr.bf16.mxu0 %v3648_v44  ;;  %1904 = vmatprep.subr.bf16.mxu1 %v3335_v18 }
 0x654   :  { %1864 = vmatpush1.bf16.msra.mxu0 %v3655_v25  ;;  %1905 = vmatpush1.bf16.msra.mxu1 %v3341_v19  ;;  %v3983_v19 = vld [vmem:[#allocation19_spill] sm:$0xff] }
 0x655   :  { %1865 = vmatprep.subr.bf16.mxu0 %v3662_v32  ;;  %1906 = vmatprep.subr.bf16.mxu1 %v3347_v20 }
 0x658   :  { %1866 = vmatpush1.bf16.msra.mxu0 %v3669_v33  ;;  %1907 = vmatpush1.bf16.msra.mxu1 %v3353_v21 }
 0x659   :  { %1867 = vmatprep.subr.bf16.mxu0 %v3722_v29  ;;  %1908 = vmatprep.subr.bf16.mxu1 %v3359_v22 }
 0x65c   :  { %1868 = vmatpush1.bf16.msra.mxu0 %v3729_v40  ;;  %1909 = vmatpush1.bf16.msra.mxu1 %v3365_v23 }
 0x65d   :  { %1973 = vmatprep.subr.bf16.mxu0 %v3564_v31  ;;  %2014 = vmatprep.subr.bf16.mxu1 %v3267_v51 }
 0x712   :  { %v1767_v4 = vpop.f32.mrb[20].mxu0  ;;  %v1808_v7 = vpop.f32.mrb[56].mxu1 }
 0x713   :  { %v1815_v10 = vadd.f32 %v1767_v4, %v3980_v8  ;;  %v1817_v12 = vadd.f32 %v1808_v7, %v3981_v11  ;;  %v1769_v14 = vpop.f32.mrb[21].mxu0  ;;  %v1810_v16 = vpop.f32.mrb[57].mxu1  ;;  %v3986_v7 = vld [vmem:[#allocation11_spill] sm:$0xff]  ;;  %v3987_v8 = vld [vmem:[#allocation21_spill] sm:$0xff] }
 0x714   :  { %v1816_v18 = vadd.f32 %v1769_v14, %v3982_v17  ;;  %v1818_v20 = vadd.f32 %v1810_v16, %v3983_v19  ;;  %v1771_v21 = vpop.f32.mrb[22].mxu0  ;;  %v1812_v22 = vpop.f32.mrb[58].mxu1 }
 0x715   :  { %v2366_v35 = vmul.f32 -1.442695, %v1815_v10  ;;  %v1772_v23 = vpop.f32.mrb[23].mxu0  ;;  %v1813_v24 = vpop.f32.mrb[59].mxu1 }
 0x716   :  { %v2367_v31 = vmul.f32 -1.442695, %v1816_v18  ;;  %v2368_v51 = vmul.f32 -1.442695, %v1818_v20 }
 0x717   :  { %2657 = vpow2.f32 %v2366_v35 }
 0x718   :  { %2659 = vpow2.f32 %v2367_v31 }
 0x719   :  { %2661 = vpow2.f32 %v2368_v51 }
 0x71a   :  { %2663 = vtanh.f32 %v1817_v12 }
 0x721   :  { %v2658_v54 = vpop.eup %2657 }
 0x722   :  { %v2660_v46 = vpop.eup %2659  ;;  %v1825_v55 = vadd.f32 1.0, %v2658_v54 }
 0x723   :  { %v1826_v53 = vadd.f32 1.0, %v2660_v46  ;;  %v2662_v57 = vpop.eup %2661 }
 0x724   :  { %2665 = vrcp.f32 %v1825_v55  ;;  %v2664_v61 = vpop.eup %2663  ;;  %v1835_v3 = vadd.f32 1.0, %v2662_v57 }
 0x725   :  { %2667 = vrcp.f32 %v1826_v53 }
 0x726   :  { %2669 = vrcp.f32 %v1835_v3  ;;  %v2093_v3 = vpack.c.bf16 %v3525_v26, %v3479_v59  ;;  %v2573_v59 = vld [vmem:[%s3946_s8 + $0x20] sm:$0xff]   ;;  %v2574_v26 = vld [vmem:[%s3946_s8 + $0x28] sm:$0xff]  }
 0x72e   :  { %v2666_v49 = vpop.eup %2665 }
 0x72f   :  { %v2668_v5 = vpop.eup %2667  ;;  %v1839_v30 = vmul.f32 %v2666_v49, %v2664_v61 }
 0x730   :  { %v1838_v50 = vmul.f32 %v2668_v5, %v3740_v60  ;;  %v2670_v34 = vpop.eup %2669 }
 0x732   :  { %v3786_v0 = vadd.f32 %v1839_v30, %v1838_v50  ;;  %v2570_v30 = vld [vmem:[%s3946_s8 + $0x8] sm:$0xff]   ;;  %v2571_v50 = vld [vmem:[%s3946_s8 + $0x10] sm:$0xff]  }
 0x734   :  { %2671 = vtanh.f32 %v3786_v0 }
 0x73e   :  { %v2672_v36 = vpop.eup %2671 }
 0x73f   :  { %v3789_v37 = vmul.f32 %v2672_v36, %v2670_v34  ;;  %v2575_v34 = vld [vmem:[%s3946_s8 + $0x30] sm:$0xff]   ;;  %v2576_v36 = vld [vmem:[%s3946_s8 + $0x38] sm:$0xff]  }
 0x741   :  { %v1852_v39 = vpack.c.bf16 %v3789_v37, %v3789_v37 }
 0x743   :  { %1886 = vmatmul.mubr.bf16.vlgmr.msra.gmra.mrb[24].mxu0 %v1852_v39  ;;  %1927 = vmatmul.mubr.bf16.vlgmr.msra.gmra.mrb[60].mxu1 %v1852_v39  ;;  %v2094_v39 = vpack.c.bf16 %v3687_v38, %v3576_v41 }
 0x744   :  { %1974 = vmatpush1.bf16.msra.mxu0 %v3583_v48  ;;  %2015 = vmatpush1.bf16.msra.mxu1 %v2721_v42  ;;  %v2723_v48 = vld [vmem:[%s3942_s6 + $0x28] ss:$16 sps:$4 sm:$0xff]   ;;  %v2095_v42 = vpack.c.bf16 %v3789_v37, %v3743_v1 }
 0x745   :  { %1975 = vmatprep.subr.bf16.mxu0 %v3590_v6  ;;  %2016 = vmatprep.subr.bf16.mxu1 %v2722_v43  ;;  %v2724_v6 = vld [vmem:[%s3942_s6 + $0x4c] ss:$16 sps:$4 sm:$0xff]  }
 0x746   :  { %2005 = vmatprep.mubr.bf16.mxu0 %v3971_v9  ;;  %2046 = vmatprep.mubr.bf16.mxu1 %v3971_v9  ;;  %v2725_v9 = vld [vmem:[%s3942_s6 + $0x48] ss:$16 sps:$4 sm:$0xff]  }
 0x748   :  { %1976 = vmatpush1.bf16.msra.mxu0 %v3599_v47  ;;  %2017 = vmatpush1.bf16.msra.mxu1 %v2723_v48  ;;  %v2726_v47 = vld [vmem:[%s3942_s6 + $0x6c] ss:$16 sps:$4 sm:$0xff]  }
 0x749   :  { %1977 = vmatprep.subr.bf16.mxu0 %v3606_v52  ;;  %2018 = vmatprep.subr.bf16.mxu1 %v2724_v6  ;;  %v2727_v52 = vld [vmem:[%s3942_s6 + $0x68] ss:$16 sps:$4 sm:$0xff]   ;;  %v3988_v6 = vld [vmem:[#allocation12_spill] sm:$0xff] }
 0x74c   :  { %1978 = vmatpush1.bf16.msra.mxu0 %v3613_v2  ;;  %2019 = vmatpush1.bf16.msra.mxu1 %v2725_v9  ;;  %v2728_v2 = vld [vmem:[%s3942_s6 + $0x8c] ss:$16 sps:$4 sm:$0xff]  }
 0x74d   :  { %1979 = vmatprep.subr.bf16.mxu0 %v3620_v62  ;;  %2020 = vmatprep.subr.bf16.mxu1 %v2726_v47  ;;  %v2729_v62 = vld [vmem:[%s3942_s6 + $0x88] ss:$16 sps:$4 sm:$0xff]   ;;  %v3989_v47 = vld [vmem:[#allocation22_spill] sm:$0xff] }
 0x750   :  { %1980 = vmatpush1.bf16.msra.mxu0 %v3627_v56  ;;  %2021 = vmatpush1.bf16.msra.mxu1 %v2727_v52  ;;  %v2730_v56 = vld [vmem:[%s3942_s6 + $0xac] ss:$16 sps:$4 sm:$0xff]  }
 0x751   :  { %1981 = vmatprep.subr.bf16.mxu0 %v3634_v63  ;;  %2022 = vmatprep.subr.bf16.mxu1 %v2728_v2  ;;  %v2731_v63 = vld [vmem:[%s3942_s6 + $0xa8] ss:$16 sps:$4 sm:$0xff]  }
 0x754   :  { %1982 = vmatpush1.bf16.msra.mxu0 %v3641_v58  ;;  %2023 = vmatpush1.bf16.msra.mxu1 %v2729_v62  ;;  %v2732_v58 = vld [vmem:[%s3942_s6 + $0xcc] ss:$16 sps:$4 sm:$0xff]  }
 0x755   :  { %1983 = vmatprep.subr.bf16.mxu0 %v3648_v44  ;;  %2024 = vmatprep.subr.bf16.mxu1 %v2730_v56  ;;  %v2733_v44 = vld [vmem:[%s3942_s6 + $0xc8] ss:$16 sps:$4 sm:$0xff]  }
 0x756   :  { %v3990_v56 = vld [vmem:[#allocation13_spill] sm:$0xff] }
 0x758   :  { %1984 = vmatpush1.bf16.msra.mxu0 %v3655_v25  ;;  %2025 = vmatpush1.bf16.msra.mxu1 %v2731_v63  ;;  %v2734_v25 = vld [vmem:[%s3942_s6 + $0xec] ss:$16 sps:$4 sm:$0xff]  }
 0x759   :  { %1985 = vmatprep.subr.bf16.mxu0 %v3662_v32  ;;  %2026 = vmatprep.subr.bf16.mxu1 %v2732_v58  ;;  %v2735_v32 = vld [vmem:[%s3942_s6 + $0xe8] ss:$16 sps:$4 sm:$0xff]  }
 0x75a   :  { %v3991_v58 = vld [vmem:[#allocation23_spill] sm:$0xff] }
 0x75c   :  { %1986 = vmatpush1.bf16.msra.mxu0 %v3669_v33  ;;  %2027 = vmatpush1.bf16.msra.mxu1 %v2733_v44  ;;  %v2569_v33 = vld [vmem:[%s3946_s8] sm:$0xff]  }
 0x75d   :  { %1987 = vmatprep.subr.bf16.mxu0 %v3722_v29  ;;  %2028 = vmatprep.subr.bf16.mxu1 %v2734_v25  ;;  %v3984_v29 = vld [vmem:[#allocation10_spill] sm:$0xff] }
 0x760   :  { %1988 = vmatpush1.bf16.msra.mxu0 %v3729_v40  ;;  %2029 = vmatpush1.bf16.msra.mxu1 %v2735_v32 }
 0x761   :  { %2396 = vmatprep.subr.bf16.mxu0 %v2569_v33 }
 0x816   :  { %v1887_v13 = vpop.f32.mrb[24].mxu0  ;;  %v1928_v45 = vpop.f32.mrb[60].mxu1 }
 0x817   :  { %v1935_v60 = vadd.f32 %v1887_v13, %v3984_v29  ;;  %v1937_v28 = vadd.f32 %v1928_v45, %v3985_v15  ;;  %v1889_v27 = vpop.f32.mrb[25].mxu0  ;;  %v1930_v4 = vpop.f32.mrb[61].mxu1 }
 0x818   :  { %v1936_v40 = vadd.f32 %v1889_v27, %v3986_v7  ;;  %v1938_v10 = vadd.f32 %v1930_v4, %v3987_v8  ;;  %v1891_v11 = vpop.f32.mrb[26].mxu0  ;;  %v1932_v12 = vpop.f32.mrb[62].mxu1 }
 0x819   :  { %v2369_v14 = vmul.f32 -1.442695, %v1935_v60  ;;  %v1892_v16 = vpop.f32.mrb[27].mxu0  ;;  %v1933_v17 = vpop.f32.mrb[63].mxu1 }
 0x81a   :  { %v2370_v18 = vmul.f32 -1.442695, %v1936_v40  ;;  %v2371_v19 = vmul.f32 -1.442695, %v1938_v10  ;;  %v2375_v10 = vld [vmem:[%s3947_s9] ss:$0 sm:$0xff] }
 0x81b   :  { %2673 = vpow2.f32 %v2369_v14 }
 0x81c   :  { %2675 = vpow2.f32 %v2370_v18 }
 0x81d   :  { %2677 = vpow2.f32 %v2371_v19 }
 0x81e   :  { %2679 = vtanh.f32 %v1937_v28 }
 0x825   :  { %v2674_v20 = vpop.eup %2673 }
 0x826   :  { %v2676_v21 = vpop.eup %2675  ;;  %v1945_v22 = vadd.f32 1.0, %v2674_v20 }
 0x827   :  { %v1946_v35 = vadd.f32 1.0, %v2676_v21  ;;  %v2678_v23 = vpop.eup %2677 }
 0x828   :  { %2681 = vrcp.f32 %v1945_v22  ;;  %v2680_v24 = vpop.eup %2679  ;;  %v1955_v46 = vadd.f32 1.0, %v2678_v23 }
 0x829   :  { %2683 = vrcp.f32 %v1946_v35 }
 0x82a   :  { %2685 = vrcp.f32 %v1955_v46 }
 0x832   :  { %v2682_v31 = vpop.eup %2681 }
 0x833   :  { %v2684_v51 = vpop.eup %2683  ;;  %v1959_v54 = vmul.f32 %v2682_v31, %v2680_v24 }
 0x834   :  { %v1958_v55 = vmul.f32 %v2684_v51, %v3786_v0  ;;  %v2686_v57 = vpop.eup %2685  ;;  %v2572_v0 = vld [vmem:[%s3946_s8 + $0x18] sm:$0xff]  }
 0x836   :  { %v3863_v53 = vadd.f32 %v1959_v54, %v1958_v55 }
 0x838   :  { %2687 = vtanh.f32 %v3863_v53 }
 0x842   :  { %v2688_v61 = vpop.eup %2687 }
 0x843   :  { %v3866_v49 = vmul.f32 %v2688_v61, %v2686_v57 }
 0x845   :  { %v1972_v5 = vpack.c.bf16 %v3866_v49, %v3866_v49 }
 0x847   :  { %2006 = vmatmul.mubr.bf16.vlgmr.msra.gmra.mrb[28].mxu0 %v1972_v5  ;;  %2047 = vmatmul.mubr.bf16.vlgmr.msra.gmra.mrb[64].mxu1 %v1972_v5 }
 0x848   :  { %2397 = vmatpush3.bf16.msra.mxu0 %v2569_v33  ;;  %2412 = vmatprep.mubr.bf16.mxu0 %v2093_v3 }
 0x849   :  { %2398 = vmatprep.subr.bf16.mxu0 %v2570_v30 }
 0x84c   :  { %2399 = vmatpush3.bf16.msra.mxu0 %v2570_v30 }
 0x84d   :  { %2400 = vmatprep.subr.bf16.mxu0 %v2571_v50 }
 0x850   :  { %2401 = vmatpush3.bf16.msra.mxu0 %v2571_v50 }
 0x851   :  { %2402 = vmatprep.subr.bf16.mxu0 %v2572_v0 }
 0x854   :  { %2403 = vmatpush3.bf16.msra.mxu0 %v2572_v0 }
 0x855   :  { %2404 = vmatprep.subr.bf16.mxu0 %v2573_v59 }
 0x858   :  { %2405 = vmatpush3.bf16.msra.mxu0 %v2573_v59 }
 0x859   :  { %2406 = vmatprep.subr.bf16.mxu0 %v2574_v26 }
 0x85c   :  { %2407 = vmatpush3.bf16.msra.mxu0 %v2574_v26 }
 0x85d   :  { %2408 = vmatprep.subr.bf16.mxu0 %v2575_v34 }
 0x860   :  { %2409 = vmatpush3.bf16.msra.mxu0 %v2575_v34 }
 0x861   :  { %2410 = vmatprep.subr.bf16.mxu0 %v2576_v36 }
 0x864   :  { %2411 = vmatpush3.bf16.msra.mxu0 %v2576_v36 }
 0x867   :  { %2413 = vmatmul.mubr.bf16.vlgmr.msra.gmra.mrb[32].mxu0 %v2094_v39 }
 0x868   :  { %2416 = vmatprep.mubr.bf16.mxu0 %v2095_v42 }
 0x91a   :  { %v2007_v43 = vpop.f32.mrb[28].mxu0  ;;  %v2048_v48 = vpop.f32.mrb[64].mxu1 }
 0x91b   :  { %v2055_v9 = vadd.f32 %v2007_v43, %v3988_v6  ;;  %v2057_v52 = vadd.f32 %v2048_v48, %v3989_v47  ;;  %v2009_v2 = vpop.f32.mrb[29].mxu0  ;;  %v2050_v62 = vpop.f32.mrb[65].mxu1 }
 0x91c   :  { %v2056_v63 = vadd.f32 %v2009_v2, %v3990_v56  ;;  %v2058_v44 = vadd.f32 %v2050_v62, %v3991_v58  ;;  %v2011_v25 = vpop.f32.mrb[30].mxu0  ;;  %v2052_v32 = vpop.f32.mrb[66].mxu1 }
 0x91d   :  { %v2372_v41 = vmul.f32 -1.442695, %v2055_v9  ;;  %v2012_v38 = vpop.f32.mrb[31].mxu0  ;;  %v2053_v33 = vpop.f32.mrb[67].mxu1 }
 0x91e   :  { %v2373_v1 = vmul.f32 -1.442695, %v2056_v63  ;;  %v2374_v37 = vmul.f32 -1.442695, %v2058_v44 }
 0x91f   :  { %2689 = vpow2.f32 %v2372_v41 }
 0x920   :  { %2691 = vpow2.f32 %v2373_v1 }
 0x921   :  { %2693 = vpow2.f32 %v2374_v37 }
 0x922   :  { %2695 = vtanh.f32 %v2057_v52 }
 0x929   :  { %v2690_v13 = vpop.eup %2689 }
 0x92a   :  { %v2692_v45 = vpop.eup %2691  ;;  %v2065_v29 = vadd.f32 1.0, %v2690_v13 }
 0x92b   :  { %v2066_v60 = vadd.f32 1.0, %v2692_v45  ;;  %v2694_v15 = vpop.eup %2693 }
 0x92c   :  { %2697 = vrcp.f32 %v2065_v29  ;;  %v2696_v28 = vpop.eup %2695  ;;  %v2075_v40 = vadd.f32 1.0, %v2694_v15 }
 0x92d   :  { %2699 = vrcp.f32 %v2066_v60 }
 0x92e   :  { %2701 = vrcp.f32 %v2075_v40 }
 0x936   :  { %v2698_v27 = vpop.eup %2697 }
 0x937   :  { %v2700_v4 = vpop.eup %2699  ;;  %v2079_v7 = vmul.f32 %v2698_v27, %v2696_v28 }
 0x938   :  { %v2078_v8 = vmul.f32 %v2700_v4, %v3863_v53  ;;  %v2702_v22 = vpop.eup %2701 }
 0x93a   :  { %v2414_v11 = vpop.f32.mrb[32].mxu0  ;;  %v2080_v12 = vadd.f32 %v2079_v7, %v2078_v8 }
 0x93b   :  { %v2211_v14 = vadd.f32 %v2414_v11, %v2375_v10  ;;  %v2202_v16 = vpop.f32.mrb[33].mxu0 }
 0x93c   :  { %v2203_v17 = vadd.f32 %v2375_v10, %v2202_v16  ;;  %v2415_v18 = vpop.f32.mrb[34].mxu0  ;;  %2703 = vtanh.f32 %v2080_v12 }
 0x93d   :  { %2236 = vst.msk [vmem:[%s3948_s10 + $0x10] sm:$0xff] %vm2233_vm0, %v2211_v14  ;;  %v2214_v19 = vadd.f32 %v2415_v18, %v2375_v10  ;;  %v2205_v20 = vpop.f32.mrb[35].mxu0 }
 0x93e   :  { %2234 = vst.msk [vmem:[%s3948_s10] sm:$0xff] %vm2233_vm0, %v2203_v17  ;;  %v2206_v21 = vadd.f32 %v2375_v10, %v2205_v20 }
 0x93f   :  { %2237 = vst.msk [vmem:[%s3948_s10 + $0x18] sm:$0xff] %vm2233_vm0, %v2214_v19 }
 0x940   :  { %2235 = vst.msk [vmem:[%s3948_s10 + $0x8] sm:$0xff] %vm2233_vm0, %v2206_v21 }
 0x946   :  { %v2704_v35 = vpop.eup %2703 }
 0x947   :  { %v2082_v23 = vmul.f32 %v2704_v35, %v2702_v22 }
 0x949   :  { %v2096_v24 = vpack.c.bf16 %v2082_v23, %v3866_v49 }
 0x94b   :  { %2417 = vmatmul.mubr.bf16.gmra.mrb[36].mxu0 %v2096_v24 }
 0xa1e   :  { %v2418_v31 = vpop.f32.mrb[36].mxu0 }
 0xa1f   :  { %v2227_v51 = vadd.f32 %v2418_v31, %v2375_v10  ;;  %v2218_v54 = vpop.f32.mrb[37].mxu0 }
 0xa20   :  { %v2219_v46 = vadd.f32 %v2375_v10, %v2218_v54  ;;  %v2419_v55 = vpop.f32.mrb[38].mxu0 }
 0xa21   :  { %2240 = vst.msk [vmem:[%s3948_s10 + $0x30] sm:$0xff] %vm2233_vm0, %v2227_v51  ;;  %v2230_v53 = vadd.f32 %v2419_v55, %v2375_v10  ;;  %v2221_v57 = vpop.f32.mrb[39].mxu0 }
 0xa22   :  { %2238 = vst.msk [vmem:[%s3948_s10 + $0x20] sm:$0xff] %vm2233_vm0, %v2219_v46  ;;  %v2222_v61 = vadd.f32 %v2375_v10, %v2221_v57 }
 0xa23   :  { %2241 = vst.msk [vmem:[%s3948_s10 + $0x38] sm:$0xff] %vm2233_vm0, %v2230_v53 }
 0xa24   :  { %2239 = vst.msk [vmem:[%s3948_s10 + $0x28] sm:$0xff] %vm2233_vm0, %v2222_v61 }

</bundles_post_ra>
